<compile_context>
chip_gen: v7x
topology: tpu7x:2x2x1
jax: 0.10.0
libtpu: 0.0.40
codegen_flags: <defaults>
</compile_context>

<pallas_src>
import functools

import jax
import jax.numpy as jnp
from jax.experimental import pallas as pl
from jax.experimental.pallas import tpu as pltpu


def _sentiment_rnn_kernel(x_ref, wih0_ref, whh0_ref, b0_ref,
                          w1_ref, b1_ref, wfc_ref, bfc_ref,
                          out_ref, gx_ref,
                          *, hidden_dim, seq_len, tb, t_chunk):
    H = hidden_dim
    T = seq_len
    TB = tb
    TC = t_chunk
    E = x_ref.shape[2]
    R = TC * TB
    n_chunks = T // TC

    # ---- Hoisted layer-0 input projection, time-chunked into bf16 scratch ---
    wih0 = wih0_ref[...]
    b0b = jnp.broadcast_to(b0_ref[...], (R, 4 * H))        # broadcast once

    def proj(c, carry):
        t0 = pl.multiple_of(c * TC, TC)
        xc = x_ref[pl.ds(t0, TC), :, :].reshape(R, E)
        g = jnp.dot(xc, wih0, preferred_element_type=jnp.float32) + b0b
        gx_ref[pl.ds(t0, TC), :, :] = g.reshape(TC, TB, 4 * H).astype(gx_ref.dtype)
        return carry

    jax.lax.fori_loop(0, n_chunks, proj, 0, unroll=(n_chunks <= 8))

    # ---- Hoisted loop-invariants ---------------------------------------------
    whh0 = whh0_ref[...]
    w1 = w1_ref[...]                                        # (2H, 4H) fused l1 weight
    b1 = jnp.broadcast_to(b1_ref[...], (TB, 4 * H))

    lane = jax.lax.broadcasted_iota(jnp.int32, (TB, 4 * H), 1)
    is_g = (lane >= 2 * H) & (lane < 3 * H)                 # g-gate lane mask
    pre = jnp.where(is_g, jnp.float32(2.0), jnp.float32(1.0))
    post_b = jnp.where(is_g, jnp.float32(-1.0), jnp.float32(0.0))

    def gate_acts(gates):
        # Single EUP pass: sigmoid everywhere; tanh(x) = 2*sigmoid(2x) - 1 on
        # the g quarter via hoisted VPU pre/post scale+bias.
        s = jax.nn.sigmoid(gates * pre)
        a = s * pre + post_b
        return a[:, 0:H], a[:, H:2 * H], a[:, 2 * H:3 * H], a[:, 3 * H:4 * H]

    # ---- Fused two-layer recurrence ------------------------------------------
    def step(t, carry):
        h0, c0, h1, c1 = carry
        # Layer 0: precomputed input gates + recurrent matmul.
        g0 = gx_ref[t].astype(jnp.float32) + jnp.dot(
            h0.astype(whh0.dtype), whh0, preferred_element_type=jnp.float32)
        i0, f0, gg0, o0 = gate_acts(g0)
        c0 = f0 * c0 + i0 * gg0
        h0 = o0 * jnp.tanh(c0)
        # Layer 1: single fused K=2H matmul (inter-layer dropout = identity).
        hx = jnp.concatenate([h0, h1], axis=1).astype(w1.dtype)
        g1 = jnp.dot(hx, w1, preferred_element_type=jnp.float32) + b1
        i1, f1, gg1, o1 = gate_acts(g1)
        c1 = f1 * c1 + i1 * gg1
        h1 = o1 * jnp.tanh(c1)
        return h0, c0, h1, c1

    z = jnp.zeros((TB, H), jnp.float32)
    unroll = T if T <= 16 else 4
    _, _, h1, _ = jax.lax.fori_loop(0, T, step, (z, z, z, z), unroll=unroll)

    # ---- Final Linear + Sigmoid (128-lane padded output: dense store) --------
    logits = jnp.dot(h1.astype(wfc_ref.dtype), wfc_ref[...],
                     preferred_element_type=jnp.float32) + bfc_ref[...]
    out_ref[...] = jax.nn.sigmoid(logits)


def sentiment_rnn_forward(token, embeddings, params, hidden_dim, output_dim):
    """token: (B, T) int32. Returns (B, output_dim) float32."""
    B, T = token.shape
    H = hidden_dim
    E = embeddings.shape[1]
    (wih0, whh0, b0, wih1, whh1, b1, wfc, bfc) = params

    # Glue: embedding lookup (gather) in plain JAX.
    embedded = jnp.take(embeddings, token, axis=0).astype(jnp.float32)  # (B, T, E)

    # ---- Batch tiling: biggest tile <= 128 with minimal padding --------------
    # TB <= 128 keeps per-step MXU latency ~constant while amortizing the
    # serial T-loop; batches > 128 naturally give grid >= 2 (v7x dual-TC).
    b8 = ((B + 7) // 8) * 8
    n_steps = -(-b8 // 128)                     # cdiv
    TB = ((-(-b8 // n_steps) + 7) // 8) * 8     # per-step tile, multiple of 8
    B_pad = TB * n_steps
    if B_pad != B:
        embedded = jnp.pad(embedded, ((0, B_pad - B), (0, 0), (0, 0)))
    x = jnp.transpose(embedded, (1, 0, 2)).astype(jnp.bfloat16)  # (T, B_pad, E)

    bf = lambda w: w.astype(jnp.bfloat16)
    # Fuse layer-1 weights: one K=2H matmul per step instead of two K=H.
    w1 = jnp.concatenate([wih1, whh1], axis=0)                    # (2H, 4H)

    # Pad fc output to a lane-dense 128-wide slab; slice back afterwards.
    OP = ((output_dim + 127) // 128) * 128
    wfc_p = jnp.zeros((H, OP), jnp.float32).at[:, :output_dim].set(wfc)
    wfc_p = wfc_p.astype(jnp.bfloat16)
    bfc_p = jnp.zeros((1, OP), jnp.float32).at[:, :output_dim].set(bfc)

    # Time-chunk for the hoisted projection: largest divisor of T keeping the
    # per-chunk f32 temporary <= ~1024 rows.
    TC = 1
    for d in range(1, T + 1):
        if T % d == 0 and d * TB <= 1024:
            TC = d

    # Explicit VMEM budget (x dbl-buf + bf16 gx scratch + weights + out),
    # with headroom, above the 16/32 MiB scoped defaults but below v7x's
    # 64 MiB physical limit.
    est_bytes = (
        2 * T * TB * E * 2                                         # x (bf16, dbl-buf)
        + T * TB * 4 * H * 2                                       # gx scratch (bf16)
        + 2 * 2 * (E * 4 * H + H * 4 * H + 2 * H * 4 * H + H * OP) # weights (bf16, dbl)
        + 2 * 4 * (2 * 4 * H + OP)                                 # biases (f32, dbl)
        + 2 * TB * OP * 4                                          # out (f32, dbl-buf)
    )
    vmem_limit = int(min(max(2 * est_bytes, 32 * 2 ** 20), 56 * 2 ** 20))

    kernel = functools.partial(_sentiment_rnn_kernel,
                               hidden_dim=H, seq_len=T, tb=TB, t_chunk=TC)

    out = pl.pallas_call(
        kernel,
        out_shape=jax.ShapeDtypeStruct((B_pad, OP), jnp.float32),
        grid_spec=pltpu.PrefetchScalarGridSpec(
            num_scalar_prefetch=0,
            grid=(B_pad // TB,),
            in_specs=[
                pl.BlockSpec((T, TB, E), lambda i: (0, i, 0)),    # x (time-major)
                pl.BlockSpec((E, 4 * H), lambda i: (0, 0)),       # W_ih l0
                pl.BlockSpec((H, 4 * H), lambda i: (0, 0)),       # W_hh l0
                pl.BlockSpec((1, 4 * H), lambda i: (0, 0)),       # b l0
                pl.BlockSpec((2 * H, 4 * H), lambda i: (0, 0)),   # fused W l1
                pl.BlockSpec((1, 4 * H), lambda i: (0, 0)),       # b l1
                pl.BlockSpec((H, OP), lambda i: (0, 0)),          # W_fc (padded)
                pl.BlockSpec((1, OP), lambda i: (0, 0)),          # b_fc (padded)
            ],
            out_specs=pl.BlockSpec((TB, OP), lambda i: (i, 0)),
            scratch_shapes=[pltpu.VMEM((T, TB, 4 * H), jnp.bfloat16)],
        ),
        compiler_params=pltpu.CompilerParams(
            dimension_semantics=("parallel",),
            vmem_limit_bytes=vmem_limit),
    )(x, bf(wih0), bf(whh0), b0, bf(w1), b1, wfc_p, bfc_p)

    return out[:B, :output_dim]


def init_params(key, vocab_size, embedding_dim, hidden_dim, output_dim):
    """Deterministic synthetic weights mirroring nn.Embedding / nn.LSTM / nn.Linear shapes."""
    ks = jax.random.split(key, 12)
    E, H, O = embedding_dim, hidden_dim, output_dim
    k_lstm = 1.0 / jnp.sqrt(jnp.float32(H))
    k_fc = 1.0 / jnp.sqrt(jnp.float32(H))

    embeddings = jax.random.normal(ks[0], (vocab_size, E), jnp.float32)

    def u(k, shape, bound):
        return jax.random.uniform(k, shape, jnp.float32, -bound, bound)

    # PyTorch LSTM weights: weight_ih_l0 (4H, E), weight_hh_l0 (4H, H), biases (4H,).
    # Pre-transpose to (in, 4H), gate order i,f,g,o, combine the two biases.
    wih0 = u(ks[1], (4 * H, E), k_lstm).T          # (E, 4H)
    whh0 = u(ks[2], (4 * H, H), k_lstm).T          # (H, 4H)
    b0 = (u(ks[3], (4 * H,), k_lstm) + u(ks[4], (4 * H,), k_lstm)).reshape(1, 4 * H)
    wih1 = u(ks[5], (4 * H, H), k_lstm).T          # (H, 4H)
    whh1 = u(ks[6], (4 * H, H), k_lstm).T          # (H, 4H)
    b1 = (u(ks[7], (4 * H,), k_lstm) + u(ks[8], (4 * H,), k_lstm)).reshape(1, 4 * H)
    # fc: nn.Linear(H, O) -> weight (O, H), bias (O,); pre-transpose.
    wfc = u(ks[9], (O, H), k_fc).T                 # (H, O)
    bfc = u(ks[10], (O,), k_fc).reshape(1, O)      # (1, O)

    params = (wih0, whh0, b0, wih1, whh1, b1, wfc, bfc)
    return embeddings, params


if __name__ == "__main__":
    vocab_size = 50
    embedding_dim = 32
    hidden_dim = 32
    output_dim = 1
    batch = 2
    seq = 8

    key = jax.random.PRNGKey(0)
    k_emb, k_tok = jax.random.split(key)
    embeddings, params = init_params(k_emb, vocab_size, embedding_dim,
                                     hidden_dim, output_dim)
    token = jax.random.randint(k_tok, (batch, seq), 0, vocab_size, dtype=jnp.int32)

    out = sentiment_rnn_forward(token, embeddings, params, hidden_dim, output_dim)
    out = jax.block_until_ready(out)
    assert out.shape == (batch, output_dim)
    assert bool(jnp.all((out >= 0.0) & (out <= 1.0)))
    print("KERNEL_OK")
</pallas_src>

<mosaic_0001>
module attributes {stable_mosaic.version = 11 : i64} {
  func.func @_sentiment_rnn_kernel(%arg0: i32, %arg1: memref<8x8x32xbf16, #tpu.memory_space<vmem>>, %arg2: memref<32x128xbf16, #tpu.memory_space<vmem>>, %arg3: memref<32x128xbf16, #tpu.memory_space<vmem>>, %arg4: memref<1x128xf32, #tpu.memory_space<vmem>>, %arg5: memref<64x128xbf16, #tpu.memory_space<vmem>>, %arg6: memref<1x128xf32, #tpu.memory_space<vmem>>, %arg7: memref<32x128xbf16, #tpu.memory_space<vmem>>, %arg8: memref<1x128xf32, #tpu.memory_space<vmem>>, %arg9: memref<8x128xf32, #tpu.memory_space<vmem>>, %arg10: memref<8x8x128xbf16, #tpu.memory_space<vmem>>) attributes {dimension_semantics = [#tpu.dimension_semantics<parallel>], iteration_bounds = array<i64: 1>, scalar_prefetch = 0 : i64, scratch_operands = 1 : i64, tpu.core_type = #tpu.core_type<tc>, window_params = [{transform_indices = @transform_0, window_bounds = array<i64: 8, 8, 32>}, {pipeline_mode = #tpu.pipeline_mode<synchronous>, transform_indices = @transform_1, window_bounds = array<i64: 32, 128>}, {pipeline_mode = #tpu.pipeline_mode<synchronous>, transform_indices = @transform_2, window_bounds = array<i64: 32, 128>}, {pipeline_mode = #tpu.pipeline_mode<synchronous>, transform_indices = @transform_3, window_bounds = array<i64: 1, 128>}, {pipeline_mode = #tpu.pipeline_mode<synchronous>, transform_indices = @transform_4, window_bounds = array<i64: 64, 128>}, {pipeline_mode = #tpu.pipeline_mode<synchronous>, transform_indices = @transform_5, window_bounds = array<i64: 1, 128>}, {pipeline_mode = #tpu.pipeline_mode<synchronous>, transform_indices = @transform_6, window_bounds = array<i64: 32, 128>}, {pipeline_mode = #tpu.pipeline_mode<synchronous>, transform_indices = @transform_7, window_bounds = array<i64: 1, 128>}, {transform_indices = @transform_8, window_bounds = array<i64: 8, 128>}]} {
    %c0 = arith.constant 0 : index
    %c0_0 = arith.constant 0 : index
    %0 = vector.load %arg2[%c0, %c0_0] : memref<32x128xbf16, #tpu.memory_space<vmem>>, vector<32x128xbf16>
    %c0_1 = arith.constant 0 : index
    %c0_2 = arith.constant 0 : index
    %1 = vector.load %arg4[%c0_1, %c0_2] : memref<1x128xf32, #tpu.memory_space<vmem>>, vector<1x128xf32>
    %2 = vector.shape_cast %1 : vector<1x128xf32> to vector<1x128xf32>
    %3 = vector.broadcast %2 : vector<1x128xf32> to vector<64x128xf32>
    %c0_i32 = arith.constant 0 : i32
    %c8_i32 = arith.constant 8 : i32
    %4 = arith.muli %c0_i32, %c8_i32 : i32
    %5 = tpu.assume_multiple %4, 8 : i32
    %6 = arith.index_cast %5 : i32 to index
    %c0_3 = arith.constant 0 : index
    %c0_4 = arith.constant 0 : index
    %7 = vector.load %arg1[%6, %c0_3, %c0_4] : memref<8x8x32xbf16, #tpu.memory_space<vmem>>, vector<8x8x32xbf16>
    %8 = vector.shape_cast %7 : vector<8x8x32xbf16> to vector<64x32xbf16>
    %cst = arith.constant dense<0.000000e+00> : vector<64x128xf32>
    %9 = tpu.matmul %8, %0, %cst {dimension_numbers = #tpu.dot_dimension_numbers<[1], [0], [0], [1], [0, 0, 1, 1], [], []>} : vector<64x32xbf16>, vector<32x128xbf16>, vector<64x128xf32> -> vector<64x128xf32>
    %10 = arith.addf %9, %3 : vector<64x128xf32>
    %11 = vector.shape_cast %10 : vector<64x128xf32> to vector<8x8x128xf32>
    %12 = arith.truncf %11 : vector<8x8x128xf32> to vector<8x8x128xbf16>
    %13 = arith.index_cast %5 : i32 to index
    %c0_5 = arith.constant 0 : index
    %c0_6 = arith.constant 0 : index
    %14 = vector.load %arg10[%13, %c0_5, %c0_6] : memref<8x8x128xbf16, #tpu.memory_space<vmem>>, vector<8x8x128xbf16>
    tpu.vector_store %arg10[%13, %c0_5, %c0_6], %12 {strides = array<i32>} : memref<8x8x128xbf16, #tpu.memory_space<vmem>>, vector<8x8x128xbf16>,
    %c1_i32 = arith.constant 1 : i32
    %c0_7 = arith.constant 0 : index
    %c0_8 = arith.constant 0 : index
    %15 = vector.load %arg3[%c0_7, %c0_8] : memref<32x128xbf16, #tpu.memory_space<vmem>>, vector<32x128xbf16>
    %c0_9 = arith.constant 0 : index
    %c0_10 = arith.constant 0 : index
    %16 = vector.load %arg5[%c0_9, %c0_10] : memref<64x128xbf16, #tpu.memory_space<vmem>>, vector<64x128xbf16>
    %c0_11 = arith.constant 0 : index
    %c0_12 = arith.constant 0 : index
    %17 = vector.load %arg6[%c0_11, %c0_12] : memref<1x128xf32, #tpu.memory_space<vmem>>, vector<1x128xf32>
    %18 = vector.shape_cast %17 : vector<1x128xf32> to vector<1x128xf32>
    %19 = vector.broadcast %18 : vector<1x128xf32> to vector<8x128xf32>
    %20 = tpu.iota {dimensions = array<i32: 1>} : vector<8x128xi32>
    %c64_i32 = arith.constant 64 : i32
    %21 = vector.broadcast %c64_i32 : i32 to vector<8x128xi32>
    %22 = arith.cmpi sge, %20, %21 : vector<8x128xi32>
    %c96_i32 = arith.constant 96 : i32
    %23 = vector.broadcast %c96_i32 : i32 to vector<8x128xi32>
    %24 = arith.cmpi slt, %20, %23 : vector<8x128xi32>
    %25 = arith.andi %22, %24 : vector<8x128xi1>
    %cst_13 = arith.constant 2.000000e+00 : f32
    %cst_14 = arith.constant 1.000000e+00 : f32
    %26 = vector.broadcast %cst_13 : f32 to vector<8x128xf32>
    %27 = vector.broadcast %cst_14 : f32 to vector<8x128xf32>
    %28 = arith.select %25, %26, %27 : vector<8x128xi1>, vector<8x128xf32>
    %cst_15 = arith.constant -1.000000e+00 : f32
    %cst_16 = arith.constant 0.000000e+00 : f32
    %29 = vector.broadcast %cst_15 : f32 to vector<8x128xf32>
    %30 = vector.broadcast %cst_16 : f32 to vector<8x128xf32>
    %31 = arith.select %25, %29, %30 : vector<8x128xi1>, vector<8x128xf32>
    %cst_17 = arith.constant 0.000000e+00 : f32
    %32 = vector.broadcast %cst_17 : f32 to vector<8x32xf32>
    %c0_i32_18 = arith.constant 0 : i32
    %33 = arith.index_cast %c0_i32_18 : i32 to index
    %c0_19 = arith.constant 0 : index
    %c0_20 = arith.constant 0 : index
    %34 = vector.load %arg10[%33, %c0_19, %c0_20] : memref<8x8x128xbf16, #tpu.memory_space<vmem>>, vector<1x8x128xbf16>
    %35 = vector.shape_cast %34 : vector<1x8x128xbf16> to vector<8x128xbf16>
    %36 = arith.extf %35 : vector<8x128xbf16> to vector<8x128xf32>
    %37 = arith.truncf %32 : vector<8x32xf32> to vector<8x32xbf16>
    %cst_21 = arith.constant dense<0.000000e+00> : vector<8x128xf32>
    %38 = tpu.matmul %37, %15, %cst_21 {dimension_numbers = #tpu.dot_dimension_numbers<[1], [0], [0], [1], [0, 0, 1, 1], [], []>} : vector<8x32xbf16>, vector<32x128xbf16>, vector<8x128xf32> -> vector<8x128xf32>
    %39 = arith.addf %36, %38 : vector<8x128xf32>
    %40 = arith.mulf %39, %28 : vector<8x128xf32>
    %41 = arith.negf %40 : vector<8x128xf32>
    %42 = math.exp %41 : vector<8x128xf32>
    %cst_22 = arith.constant 1.000000e+00 : f32
    %43 = vector.broadcast %cst_22 : f32 to vector<8x128xf32>
    %44 = arith.addf %43, %42 : vector<8x128xf32>
    %45 = arith.divf %43, %44 : vector<8x128xf32>
    %46 = arith.mulf %45, %28 : vector<8x128xf32>
    %47 = arith.addf %46, %31 : vector<8x128xf32>
    %48 = vector.extract_strided_slice %47 {offsets = [0, 0], sizes = [8, 32], strides = [1, 1]} : vector<8x128xf32> to vector<8x32xf32>
    %49 = vector.extract_strided_slice %47 {offsets = [0, 32], sizes = [8, 32], strides = [1, 1]} : vector<8x128xf32> to vector<8x32xf32>
    %50 = vector.extract_strided_slice %47 {offsets = [0, 64], sizes = [8, 32], strides = [1, 1]} : vector<8x128xf32> to vector<8x32xf32>
    %51 = vector.extract_strided_slice %47 {offsets = [0, 96], sizes = [8, 32], strides = [1, 1]} : vector<8x128xf32> to vector<8x32xf32>
    %52 = arith.mulf %49, %32 : vector<8x32xf32>
    %53 = arith.mulf %48, %50 : vector<8x32xf32>
    %54 = arith.addf %52, %53 : vector<8x32xf32>
    %55 = math.tanh %54 : vector<8x32xf32>
    %56 = arith.mulf %51, %55 : vector<8x32xf32>
    %57 = tpu.concatenate %56, %32 in 1 : vector<8x32xf32>, vector<8x32xf32> -> vector<8x64xf32>
    %58 = arith.truncf %57 : vector<8x64xf32> to vector<8x64xbf16>
    %cst_23 = arith.constant dense<0.000000e+00> : vector<8x128xf32>
    %59 = tpu.matmul %58, %16, %cst_23 {dimension_numbers = #tpu.dot_dimension_numbers<[1], [0], [0], [1], [0, 0, 1, 1], [], []>} : vector<8x64xbf16>, vector<64x128xbf16>, vector<8x128xf32> -> vector<8x128xf32>
    %60 = arith.addf %59, %19 : vector<8x128xf32>
    %61 = arith.mulf %60, %28 : vector<8x128xf32>
    %62 = arith.negf %61 : vector<8x128xf32>
    %63 = math.exp %62 : vector<8x128xf32>
    %cst_24 = arith.constant 1.000000e+00 : f32
    %64 = vector.broadcast %cst_24 : f32 to vector<8x128xf32>
    %65 = arith.addf %64, %63 : vector<8x128xf32>
    %66 = arith.divf %64, %65 : vector<8x128xf32>
    %67 = arith.mulf %66, %28 : vector<8x128xf32>
    %68 = arith.addf %67, %31 : vector<8x128xf32>
    %69 = vector.extract_strided_slice %68 {offsets = [0, 0], sizes = [8, 32], strides = [1, 1]} : vector<8x128xf32> to vector<8x32xf32>
    %70 = vector.extract_strided_slice %68 {offsets = [0, 32], sizes = [8, 32], strides = [1, 1]} : vector<8x128xf32> to vector<8x32xf32>
    %71 = vector.extract_strided_slice %68 {offsets = [0, 64], sizes = [8, 32], strides = [1, 1]} : vector<8x128xf32> to vector<8x32xf32>
    %72 = vector.extract_strided_slice %68 {offsets = [0, 96], sizes = [8, 32], strides = [1, 1]} : vector<8x128xf32> to vector<8x32xf32>
    %73 = arith.mulf %70, %32 : vector<8x32xf32>
    %74 = arith.mulf %69, %71 : vector<8x32xf32>
    %75 = arith.addf %73, %74 : vector<8x32xf32>
    %76 = math.tanh %75 : vector<8x32xf32>
    %77 = arith.mulf %72, %76 : vector<8x32xf32>
    %c1_i32_25 = arith.constant 1 : i32
    %78 = arith.index_cast %c1_i32_25 : i32 to index
    %c0_26 = arith.constant 0 : index
    %c0_27 = arith.constant 0 : index
    %79 = vector.load %arg10[%78, %c0_26, %c0_27] : memref<8x8x128xbf16, #tpu.memory_space<vmem>>, vector<1x8x128xbf16>
    %80 = vector.shape_cast %79 : vector<1x8x128xbf16> to vector<8x128xbf16>
    %81 = arith.extf %80 : vector<8x128xbf16> to vector<8x128xf32>
    %82 = arith.truncf %56 : vector<8x32xf32> to vector<8x32xbf16>
    %cst_28 = arith.constant dense<0.000000e+00> : vector<8x128xf32>
    %83 = tpu.matmul %82, %15, %cst_28 {dimension_numbers = #tpu.dot_dimension_numbers<[1], [0], [0], [1], [0, 0, 1, 1], [], []>} : vector<8x32xbf16>, vector<32x128xbf16>, vector<8x128xf32> -> vector<8x128xf32>
    %84 = arith.addf %81, %83 : vector<8x128xf32>
    %85 = arith.mulf %84, %28 : vector<8x128xf32>
    %86 = arith.negf %85 : vector<8x128xf32>
    %87 = math.exp %86 : vector<8x128xf32>
    %cst_29 = arith.constant 1.000000e+00 : f32
    %88 = vector.broadcast %cst_29 : f32 to vector<8x128xf32>
    %89 = arith.addf %88, %87 : vector<8x128xf32>
    %90 = arith.divf %88, %89 : vector<8x128xf32>
    %91 = arith.mulf %90, %28 : vector<8x128xf32>
    %92 = arith.addf %91, %31 : vector<8x128xf32>
    %93 = vector.extract_strided_slice %92 {offsets = [0, 0], sizes = [8, 32], strides = [1, 1]} : vector<8x128xf32> to vector<8x32xf32>
    %94 = vector.extract_strided_slice %92 {offsets = [0, 32], sizes = [8, 32], strides = [1, 1]} : vector<8x128xf32> to vector<8x32xf32>
    %95 = vector.extract_strided_slice %92 {offsets = [0, 64], sizes = [8, 32], strides = [1, 1]} : vector<8x128xf32> to vector<8x32xf32>
    %96 = vector.extract_strided_slice %92 {offsets = [0, 96], sizes = [8, 32], strides = [1, 1]} : vector<8x128xf32> to vector<8x32xf32>
    %97 = arith.mulf %94, %54 : vector<8x32xf32>
    %98 = arith.mulf %93, %95 : vector<8x32xf32>
    %99 = arith.addf %97, %98 : vector<8x32xf32>
    %100 = math.tanh %99 : vector<8x32xf32>
    %101 = arith.mulf %96, %100 : vector<8x32xf32>
    %102 = tpu.concatenate %101, %77 in 1 : vector<8x32xf32>, vector<8x32xf32> -> vector<8x64xf32>
    %103 = arith.truncf %102 : vector<8x64xf32> to vector<8x64xbf16>
    %cst_30 = arith.constant dense<0.000000e+00> : vector<8x128xf32>
    %104 = tpu.matmul %103, %16, %cst_30 {dimension_numbers = #tpu.dot_dimension_numbers<[1], [0], [0], [1], [0, 0, 1, 1], [], []>} : vector<8x64xbf16>, vector<64x128xbf16>, vector<8x128xf32> -> vector<8x128xf32>
    %105 = arith.addf %104, %19 : vector<8x128xf32>
    %106 = arith.mulf %105, %28 : vector<8x128xf32>
    %107 = arith.negf %106 : vector<8x128xf32>
    %108 = math.exp %107 : vector<8x128xf32>
    %cst_31 = arith.constant 1.000000e+00 : f32
    %109 = vector.broadcast %cst_31 : f32 to vector<8x128xf32>
    %110 = arith.addf %109, %108 : vector<8x128xf32>
    %111 = arith.divf %109, %110 : vector<8x128xf32>
    %112 = arith.mulf %111, %28 : vector<8x128xf32>
    %113 = arith.addf %112, %31 : vector<8x128xf32>
    %114 = vector.extract_strided_slice %113 {offsets = [0, 0], sizes = [8, 32], strides = [1, 1]} : vector<8x128xf32> to vector<8x32xf32>
    %115 = vector.extract_strided_slice %113 {offsets = [0, 32], sizes = [8, 32], strides = [1, 1]} : vector<8x128xf32> to vector<8x32xf32>
    %116 = vector.extract_strided_slice %113 {offsets = [0, 64], sizes = [8, 32], strides = [1, 1]} : vector<8x128xf32> to vector<8x32xf32>
    %117 = vector.extract_strided_slice %113 {offsets = [0, 96], sizes = [8, 32], strides = [1, 1]} : vector<8x128xf32> to vector<8x32xf32>
    %118 = arith.mulf %115, %75 : vector<8x32xf32>
    %119 = arith.mulf %114, %116 : vector<8x32xf32>
    %120 = arith.addf %118, %119 : vector<8x32xf32>
    %121 = math.tanh %120 : vector<8x32xf32>
    %122 = arith.mulf %117, %121 : vector<8x32xf32>
    %c2_i32 = arith.constant 2 : i32
    %123 = arith.index_cast %c2_i32 : i32 to index
    %c0_32 = arith.constant 0 : index
    %c0_33 = arith.constant 0 : index
    %124 = vector.load %arg10[%123, %c0_32, %c0_33] : memref<8x8x128xbf16, #tpu.memory_space<vmem>>, vector<1x8x128xbf16>
    %125 = vector.shape_cast %124 : vector<1x8x128xbf16> to vector<8x128xbf16>
    %126 = arith.extf %125 : vector<8x128xbf16> to vector<8x128xf32>
    %127 = arith.truncf %101 : vector<8x32xf32> to vector<8x32xbf16>
    %cst_34 = arith.constant dense<0.000000e+00> : vector<8x128xf32>
    %128 = tpu.matmul %127, %15, %cst_34 {dimension_numbers = #tpu.dot_dimension_numbers<[1], [0], [0], [1], [0, 0, 1, 1], [], []>} : vector<8x32xbf16>, vector<32x128xbf16>, vector<8x128xf32> -> vector<8x128xf32>
    %129 = arith.addf %126, %128 : vector<8x128xf32>
    %130 = arith.mulf %129, %28 : vector<8x128xf32>
    %131 = arith.negf %130 : vector<8x128xf32>
    %132 = math.exp %131 : vector<8x128xf32>
    %cst_35 = arith.constant 1.000000e+00 : f32
    %133 = vector.broadcast %cst_35 : f32 to vector<8x128xf32>
    %134 = arith.addf %133, %132 : vector<8x128xf32>
    %135 = arith.divf %133, %134 : vector<8x128xf32>
    %136 = arith.mulf %135, %28 : vector<8x128xf32>
    %137 = arith.addf %136, %31 : vector<8x128xf32>
    %138 = vector.extract_strided_slice %137 {offsets = [0, 0], sizes = [8, 32], strides = [1, 1]} : vector<8x128xf32> to vector<8x32xf32>
    %139 = vector.extract_strided_slice %137 {offsets = [0, 32], sizes = [8, 32], strides = [1, 1]} : vector<8x128xf32> to vector<8x32xf32>
    %140 = vector.extract_strided_slice %137 {offsets = [0, 64], sizes = [8, 32], strides = [1, 1]} : vector<8x128xf32> to vector<8x32xf32>
    %141 = vector.extract_strided_slice %137 {offsets = [0, 96], sizes = [8, 32], strides = [1, 1]} : vector<8x128xf32> to vector<8x32xf32>
    %142 = arith.mulf %139, %99 : vector<8x32xf32>
    %143 = arith.mulf %138, %140 : vector<8x32xf32>
    %144 = arith.addf %142, %143 : vector<8x32xf32>
    %145 = math.tanh %144 : vector<8x32xf32>
    %146 = arith.mulf %141, %145 : vector<8x32xf32>
    %147 = tpu.concatenate %146, %122 in 1 : vector<8x32xf32>, vector<8x32xf32> -> vector<8x64xf32>
    %148 = arith.truncf %147 : vector<8x64xf32> to vector<8x64xbf16>
    %cst_36 = arith.constant dense<0.000000e+00> : vector<8x128xf32>
    %149 = tpu.matmul %148, %16, %cst_36 {dimension_numbers = #tpu.dot_dimension_numbers<[1], [0], [0], [1], [0, 0, 1, 1], [], []>} : vector<8x64xbf16>, vector<64x128xbf16>, vector<8x128xf32> -> vector<8x128xf32>
    %150 = arith.addf %149, %19 : vector<8x128xf32>
    %151 = arith.mulf %150, %28 : vector<8x128xf32>
    %152 = arith.negf %151 : vector<8x128xf32>
    %153 = math.exp %152 : vector<8x128xf32>
    %cst_37 = arith.constant 1.000000e+00 : f32
    %154 = vector.broadcast %cst_37 : f32 to vector<8x128xf32>
    %155 = arith.addf %154, %153 : vector<8x128xf32>
    %156 = arith.divf %154, %155 : vector<8x128xf32>
    %157 = arith.mulf %156, %28 : vector<8x128xf32>
    %158 = arith.addf %157, %31 : vector<8x128xf32>
    %159 = vector.extract_strided_slice %158 {offsets = [0, 0], sizes = [8, 32], strides = [1, 1]} : vector<8x128xf32> to vector<8x32xf32>
    %160 = vector.extract_strided_slice %158 {offsets = [0, 32], sizes = [8, 32], strides = [1, 1]} : vector<8x128xf32> to vector<8x32xf32>
    %161 = vector.extract_strided_slice %158 {offsets = [0, 64], sizes = [8, 32], strides = [1, 1]} : vector<8x128xf32> to vector<8x32xf32>
    %162 = vector.extract_strided_slice %158 {offsets = [0, 96], sizes = [8, 32], strides = [1, 1]} : vector<8x128xf32> to vector<8x32xf32>
    %163 = arith.mulf %160, %120 : vector<8x32xf32>
    %164 = arith.mulf %159, %161 : vector<8x32xf32>
    %165 = arith.addf %163, %164 : vector<8x32xf32>
    %166 = math.tanh %165 : vector<8x32xf32>
    %167 = arith.mulf %162, %166 : vector<8x32xf32>
    %c3_i32 = arith.constant 3 : i32
    %168 = arith.index_cast %c3_i32 : i32 to index
    %c0_38 = arith.constant 0 : index
    %c0_39 = arith.constant 0 : index
    %169 = vector.load %arg10[%168, %c0_38, %c0_39] : memref<8x8x128xbf16, #tpu.memory_space<vmem>>, vector<1x8x128xbf16>
    %170 = vector.shape_cast %169 : vector<1x8x128xbf16> to vector<8x128xbf16>
    %171 = arith.extf %170 : vector<8x128xbf16> to vector<8x128xf32>
    %172 = arith.truncf %146 : vector<8x32xf32> to vector<8x32xbf16>
    %cst_40 = arith.constant dense<0.000000e+00> : vector<8x128xf32>
    %173 = tpu.matmul %172, %15, %cst_40 {dimension_numbers = #tpu.dot_dimension_numbers<[1], [0], [0], [1], [0, 0, 1, 1], [], []>} : vector<8x32xbf16>, vector<32x128xbf16>, vector<8x128xf32> -> vector<8x128xf32>
    %174 = arith.addf %171, %173 : vector<8x128xf32>
    %175 = arith.mulf %174, %28 : vector<8x128xf32>
    %176 = arith.negf %175 : vector<8x128xf32>
    %177 = math.exp %176 : vector<8x128xf32>
    %cst_41 = arith.constant 1.000000e+00 : f32
    %178 = vector.broadcast %cst_41 : f32 to vector<8x128xf32>
    %179 = arith.addf %178, %177 : vector<8x128xf32>
    %180 = arith.divf %178, %179 : vector<8x128xf32>
    %181 = arith.mulf %180, %28 : vector<8x128xf32>
    %182 = arith.addf %181, %31 : vector<8x128xf32>
    %183 = vector.extract_strided_slice %182 {offsets = [0, 0], sizes = [8, 32], strides = [1, 1]} : vector<8x128xf32> to vector<8x32xf32>
    %184 = vector.extract_strided_slice %182 {offsets = [0, 32], sizes = [8, 32], strides = [1, 1]} : vector<8x128xf32> to vector<8x32xf32>
    %185 = vector.extract_strided_slice %182 {offsets = [0, 64], sizes = [8, 32], strides = [1, 1]} : vector<8x128xf32> to vector<8x32xf32>
    %186 = vector.extract_strided_slice %182 {offsets = [0, 96], sizes = [8, 32], strides = [1, 1]} : vector<8x128xf32> to vector<8x32xf32>
    %187 = arith.mulf %184, %144 : vector<8x32xf32>
    %188 = arith.mulf %183, %185 : vector<8x32xf32>
    %189 = arith.addf %187, %188 : vector<8x32xf32>
    %190 = math.tanh %189 : vector<8x32xf32>
    %191 = arith.mulf %186, %190 : vector<8x32xf32>
    %192 = tpu.concatenate %191, %167 in 1 : vector<8x32xf32>, vector<8x32xf32> -> vector<8x64xf32>
    %193 = arith.truncf %192 : vector<8x64xf32> to vector<8x64xbf16>
    %cst_42 = arith.constant dense<0.000000e+00> : vector<8x128xf32>
    %194 = tpu.matmul %193, %16, %cst_42 {dimension_numbers = #tpu.dot_dimension_numbers<[1], [0], [0], [1], [0, 0, 1, 1], [], []>} : vector<8x64xbf16>, vector<64x128xbf16>, vector<8x128xf32> -> vector<8x128xf32>
    %195 = arith.addf %194, %19 : vector<8x128xf32>
    %196 = arith.mulf %195, %28 : vector<8x128xf32>
    %197 = arith.negf %196 : vector<8x128xf32>
    %198 = math.exp %197 : vector<8x128xf32>
    %cst_43 = arith.constant 1.000000e+00 : f32
    %199 = vector.broadcast %cst_43 : f32 to vector<8x128xf32>
    %200 = arith.addf %199, %198 : vector<8x128xf32>
    %201 = arith.divf %199, %200 : vector<8x128xf32>
    %202 = arith.mulf %201, %28 : vector<8x128xf32>
    %203 = arith.addf %202, %31 : vector<8x128xf32>
    %204 = vector.extract_strided_slice %203 {offsets = [0, 0], sizes = [8, 32], strides = [1, 1]} : vector<8x128xf32> to vector<8x32xf32>
    %205 = vector.extract_strided_slice %203 {offsets = [0, 32], sizes = [8, 32], strides = [1, 1]} : vector<8x128xf32> to vector<8x32xf32>
    %206 = vector.extract_strided_slice %203 {offsets = [0, 64], sizes = [8, 32], strides = [1, 1]} : vector<8x128xf32> to vector<8x32xf32>
    %207 = vector.extract_strided_slice %203 {offsets = [0, 96], sizes = [8, 32], strides = [1, 1]} : vector<8x128xf32> to vector<8x32xf32>
    %208 = arith.mulf %205, %165 : vector<8x32xf32>
    %209 = arith.mulf %204, %206 : vector<8x32xf32>
    %210 = arith.addf %208, %209 : vector<8x32xf32>
    %211 = math.tanh %210 : vector<8x32xf32>
    %212 = arith.mulf %207, %211 : vector<8x32xf32>
    %c4_i32 = arith.constant 4 : i32
    %213 = arith.index_cast %c4_i32 : i32 to index
    %c0_44 = arith.constant 0 : index
    %c0_45 = arith.constant 0 : index
    %214 = vector.load %arg10[%213, %c0_44, %c0_45] : memref<8x8x128xbf16, #tpu.memory_space<vmem>>, vector<1x8x128xbf16>
    %215 = vector.shape_cast %214 : vector<1x8x128xbf16> to vector<8x128xbf16>
    %216 = arith.extf %215 : vector<8x128xbf16> to vector<8x128xf32>
    %217 = arith.truncf %191 : vector<8x32xf32> to vector<8x32xbf16>
    %cst_46 = arith.constant dense<0.000000e+00> : vector<8x128xf32>
    %218 = tpu.matmul %217, %15, %cst_46 {dimension_numbers = #tpu.dot_dimension_numbers<[1], [0], [0], [1], [0, 0, 1, 1], [], []>} : vector<8x32xbf16>, vector<32x128xbf16>, vector<8x128xf32> -> vector<8x128xf32>
    %219 = arith.addf %216, %218 : vector<8x128xf32>
    %220 = arith.mulf %219, %28 : vector<8x128xf32>
    %221 = arith.negf %220 : vector<8x128xf32>
    %222 = math.exp %221 : vector<8x128xf32>
    %cst_47 = arith.constant 1.000000e+00 : f32
    %223 = vector.broadcast %cst_47 : f32 to vector<8x128xf32>
    %224 = arith.addf %223, %222 : vector<8x128xf32>
    %225 = arith.divf %223, %224 : vector<8x128xf32>
    %226 = arith.mulf %225, %28 : vector<8x128xf32>
    %227 = arith.addf %226, %31 : vector<8x128xf32>
    %228 = vector.extract_strided_slice %227 {offsets = [0, 0], sizes = [8, 32], strides = [1, 1]} : vector<8x128xf32> to vector<8x32xf32>
    %229 = vector.extract_strided_slice %227 {offsets = [0, 32], sizes = [8, 32], strides = [1, 1]} : vector<8x128xf32> to vector<8x32xf32>
    %230 = vector.extract_strided_slice %227 {offsets = [0, 64], sizes = [8, 32], strides = [1, 1]} : vector<8x128xf32> to vector<8x32xf32>
    %231 = vector.extract_strided_slice %227 {offsets = [0, 96], sizes = [8, 32], strides = [1, 1]} : vector<8x128xf32> to vector<8x32xf32>
    %232 = arith.mulf %229, %189 : vector<8x32xf32>
    %233 = arith.mulf %228, %230 : vector<8x32xf32>
    %234 = arith.addf %232, %233 : vector<8x32xf32>
    %235 = math.tanh %234 : vector<8x32xf32>
    %236 = arith.mulf %231, %235 : vector<8x32xf32>
    %237 = tpu.concatenate %236, %212 in 1 : vector<8x32xf32>, vector<8x32xf32> -> vector<8x64xf32>
    %238 = arith.truncf %237 : vector<8x64xf32> to vector<8x64xbf16>
    %cst_48 = arith.constant dense<0.000000e+00> : vector<8x128xf32>
    %239 = tpu.matmul %238, %16, %cst_48 {dimension_numbers = #tpu.dot_dimension_numbers<[1], [0], [0], [1], [0, 0, 1, 1], [], []>} : vector<8x64xbf16>, vector<64x128xbf16>, vector<8x128xf32> -> vector<8x128xf32>
    %240 = arith.addf %239, %19 : vector<8x128xf32>
    %241 = arith.mulf %240, %28 : vector<8x128xf32>
    %242 = arith.negf %241 : vector<8x128xf32>
    %243 = math.exp %242 : vector<8x128xf32>
    %cst_49 = arith.constant 1.000000e+00 : f32
    %244 = vector.broadcast %cst_49 : f32 to vector<8x128xf32>
    %245 = arith.addf %244, %243 : vector<8x128xf32>
    %246 = arith.divf %244, %245 : vector<8x128xf32>
    %247 = arith.mulf %246, %28 : vector<8x128xf32>
    %248 = arith.addf %247, %31 : vector<8x128xf32>
    %249 = vector.extract_strided_slice %248 {offsets = [0, 0], sizes = [8, 32], strides = [1, 1]} : vector<8x128xf32> to vector<8x32xf32>
    %250 = vector.extract_strided_slice %248 {offsets = [0, 32], sizes = [8, 32], strides = [1, 1]} : vector<8x128xf32> to vector<8x32xf32>
    %251 = vector.extract_strided_slice %248 {offsets = [0, 64], sizes = [8, 32], strides = [1, 1]} : vector<8x128xf32> to vector<8x32xf32>
    %252 = vector.extract_strided_slice %248 {offsets = [0, 96], sizes = [8, 32], strides = [1, 1]} : vector<8x128xf32> to vector<8x32xf32>
    %253 = arith.mulf %250, %210 : vector<8x32xf32>
    %254 = arith.mulf %249, %251 : vector<8x32xf32>
    %255 = arith.addf %253, %254 : vector<8x32xf32>
    %256 = math.tanh %255 : vector<8x32xf32>
    %257 = arith.mulf %252, %256 : vector<8x32xf32>
    %c5_i32 = arith.constant 5 : i32
    %258 = arith.index_cast %c5_i32 : i32 to index
    %c0_50 = arith.constant 0 : index
    %c0_51 = arith.constant 0 : index
    %259 = vector.load %arg10[%258, %c0_50, %c0_51] : memref<8x8x128xbf16, #tpu.memory_space<vmem>>, vector<1x8x128xbf16>
    %260 = vector.shape_cast %259 : vector<1x8x128xbf16> to vector<8x128xbf16>
    %261 = arith.extf %260 : vector<8x128xbf16> to vector<8x128xf32>
    %262 = arith.truncf %236 : vector<8x32xf32> to vector<8x32xbf16>
    %cst_52 = arith.constant dense<0.000000e+00> : vector<8x128xf32>
    %263 = tpu.matmul %262, %15, %cst_52 {dimension_numbers = #tpu.dot_dimension_numbers<[1], [0], [0], [1], [0, 0, 1, 1], [], []>} : vector<8x32xbf16>, vector<32x128xbf16>, vector<8x128xf32> -> vector<8x128xf32>
    %264 = arith.addf %261, %263 : vector<8x128xf32>
    %265 = arith.mulf %264, %28 : vector<8x128xf32>
    %266 = arith.negf %265 : vector<8x128xf32>
    %267 = math.exp %266 : vector<8x128xf32>
    %cst_53 = arith.constant 1.000000e+00 : f32
    %268 = vector.broadcast %cst_53 : f32 to vector<8x128xf32>
    %269 = arith.addf %268, %267 : vector<8x128xf32>
    %270 = arith.divf %268, %269 : vector<8x128xf32>
    %271 = arith.mulf %270, %28 : vector<8x128xf32>
    %272 = arith.addf %271, %31 : vector<8x128xf32>
    %273 = vector.extract_strided_slice %272 {offsets = [0, 0], sizes = [8, 32], strides = [1, 1]} : vector<8x128xf32> to vector<8x32xf32>
    %274 = vector.extract_strided_slice %272 {offsets = [0, 32], sizes = [8, 32], strides = [1, 1]} : vector<8x128xf32> to vector<8x32xf32>
    %275 = vector.extract_strided_slice %272 {offsets = [0, 64], sizes = [8, 32], strides = [1, 1]} : vector<8x128xf32> to vector<8x32xf32>
    %276 = vector.extract_strided_slice %272 {offsets = [0, 96], sizes = [8, 32], strides = [1, 1]} : vector<8x128xf32> to vector<8x32xf32>
    %277 = arith.mulf %274, %234 : vector<8x32xf32>
    %278 = arith.mulf %273, %275 : vector<8x32xf32>
    %279 = arith.addf %277, %278 : vector<8x32xf32>
    %280 = math.tanh %279 : vector<8x32xf32>
    %281 = arith.mulf %276, %280 : vector<8x32xf32>
    %282 = tpu.concatenate %281, %257 in 1 : vector<8x32xf32>, vector<8x32xf32> -> vector<8x64xf32>
    %283 = arith.truncf %282 : vector<8x64xf32> to vector<8x64xbf16>
    %cst_54 = arith.constant dense<0.000000e+00> : vector<8x128xf32>
    %284 = tpu.matmul %283, %16, %cst_54 {dimension_numbers = #tpu.dot_dimension_numbers<[1], [0], [0], [1], [0, 0, 1, 1], [], []>} : vector<8x64xbf16>, vector<64x128xbf16>, vector<8x128xf32> -> vector<8x128xf32>
    %285 = arith.addf %284, %19 : vector<8x128xf32>
    %286 = arith.mulf %285, %28 : vector<8x128xf32>
    %287 = arith.negf %286 : vector<8x128xf32>
    %288 = math.exp %287 : vector<8x128xf32>
    %cst_55 = arith.constant 1.000000e+00 : f32
    %289 = vector.broadcast %cst_55 : f32 to vector<8x128xf32>
    %290 = arith.addf %289, %288 : vector<8x128xf32>
    %291 = arith.divf %289, %290 : vector<8x128xf32>
    %292 = arith.mulf %291, %28 : vector<8x128xf32>
    %293 = arith.addf %292, %31 : vector<8x128xf32>
    %294 = vector.extract_strided_slice %293 {offsets = [0, 0], sizes = [8, 32], strides = [1, 1]} : vector<8x128xf32> to vector<8x32xf32>
    %295 = vector.extract_strided_slice %293 {offsets = [0, 32], sizes = [8, 32], strides = [1, 1]} : vector<8x128xf32> to vector<8x32xf32>
    %296 = vector.extract_strided_slice %293 {offsets = [0, 64], sizes = [8, 32], strides = [1, 1]} : vector<8x128xf32> to vector<8x32xf32>
    %297 = vector.extract_strided_slice %293 {offsets = [0, 96], sizes = [8, 32], strides = [1, 1]} : vector<8x128xf32> to vector<8x32xf32>
    %298 = arith.mulf %295, %255 : vector<8x32xf32>
    %299 = arith.mulf %294, %296 : vector<8x32xf32>
    %300 = arith.addf %298, %299 : vector<8x32xf32>
    %301 = math.tanh %300 : vector<8x32xf32>
    %302 = arith.mulf %297, %301 : vector<8x32xf32>
    %c6_i32 = arith.constant 6 : i32
    %303 = arith.index_cast %c6_i32 : i32 to index
    %c0_56 = arith.constant 0 : index
    %c0_57 = arith.constant 0 : index
    %304 = vector.load %arg10[%303, %c0_56, %c0_57] : memref<8x8x128xbf16, #tpu.memory_space<vmem>>, vector<1x8x128xbf16>
    %305 = vector.shape_cast %304 : vector<1x8x128xbf16> to vector<8x128xbf16>
    %306 = arith.extf %305 : vector<8x128xbf16> to vector<8x128xf32>
    %307 = arith.truncf %281 : vector<8x32xf32> to vector<8x32xbf16>
    %cst_58 = arith.constant dense<0.000000e+00> : vector<8x128xf32>
    %308 = tpu.matmul %307, %15, %cst_58 {dimension_numbers = #tpu.dot_dimension_numbers<[1], [0], [0], [1], [0, 0, 1, 1], [], []>} : vector<8x32xbf16>, vector<32x128xbf16>, vector<8x128xf32> -> vector<8x128xf32>
    %309 = arith.addf %306, %308 : vector<8x128xf32>
    %310 = arith.mulf %309, %28 : vector<8x128xf32>
    %311 = arith.negf %310 : vector<8x128xf32>
    %312 = math.exp %311 : vector<8x128xf32>
    %cst_59 = arith.constant 1.000000e+00 : f32
    %313 = vector.broadcast %cst_59 : f32 to vector<8x128xf32>
    %314 = arith.addf %313, %312 : vector<8x128xf32>
    %315 = arith.divf %313, %314 : vector<8x128xf32>
    %316 = arith.mulf %315, %28 : vector<8x128xf32>
    %317 = arith.addf %316, %31 : vector<8x128xf32>
    %318 = vector.extract_strided_slice %317 {offsets = [0, 0], sizes = [8, 32], strides = [1, 1]} : vector<8x128xf32> to vector<8x32xf32>
    %319 = vector.extract_strided_slice %317 {offsets = [0, 32], sizes = [8, 32], strides = [1, 1]} : vector<8x128xf32> to vector<8x32xf32>
    %320 = vector.extract_strided_slice %317 {offsets = [0, 64], sizes = [8, 32], strides = [1, 1]} : vector<8x128xf32> to vector<8x32xf32>
    %321 = vector.extract_strided_slice %317 {offsets = [0, 96], sizes = [8, 32], strides = [1, 1]} : vector<8x128xf32> to vector<8x32xf32>
    %322 = arith.mulf %319, %279 : vector<8x32xf32>
    %323 = arith.mulf %318, %320 : vector<8x32xf32>
    %324 = arith.addf %322, %323 : vector<8x32xf32>
    %325 = math.tanh %324 : vector<8x32xf32>
    %326 = arith.mulf %321, %325 : vector<8x32xf32>
    %327 = tpu.concatenate %326, %302 in 1 : vector<8x32xf32>, vector<8x32xf32> -> vector<8x64xf32>
    %328 = arith.truncf %327 : vector<8x64xf32> to vector<8x64xbf16>
    %cst_60 = arith.constant dense<0.000000e+00> : vector<8x128xf32>
    %329 = tpu.matmul %328, %16, %cst_60 {dimension_numbers = #tpu.dot_dimension_numbers<[1], [0], [0], [1], [0, 0, 1, 1], [], []>} : vector<8x64xbf16>, vector<64x128xbf16>, vector<8x128xf32> -> vector<8x128xf32>
    %330 = arith.addf %329, %19 : vector<8x128xf32>
    %331 = arith.mulf %330, %28 : vector<8x128xf32>
    %332 = arith.negf %331 : vector<8x128xf32>
    %333 = math.exp %332 : vector<8x128xf32>
    %cst_61 = arith.constant 1.000000e+00 : f32
    %334 = vector.broadcast %cst_61 : f32 to vector<8x128xf32>
    %335 = arith.addf %334, %333 : vector<8x128xf32>
    %336 = arith.divf %334, %335 : vector<8x128xf32>
    %337 = arith.mulf %336, %28 : vector<8x128xf32>
    %338 = arith.addf %337, %31 : vector<8x128xf32>
    %339 = vector.extract_strided_slice %338 {offsets = [0, 0], sizes = [8, 32], strides = [1, 1]} : vector<8x128xf32> to vector<8x32xf32>
    %340 = vector.extract_strided_slice %338 {offsets = [0, 32], sizes = [8, 32], strides = [1, 1]} : vector<8x128xf32> to vector<8x32xf32>
    %341 = vector.extract_strided_slice %338 {offsets = [0, 64], sizes = [8, 32], strides = [1, 1]} : vector<8x128xf32> to vector<8x32xf32>
    %342 = vector.extract_strided_slice %338 {offsets = [0, 96], sizes = [8, 32], strides = [1, 1]} : vector<8x128xf32> to vector<8x32xf32>
    %343 = arith.mulf %340, %300 : vector<8x32xf32>
    %344 = arith.mulf %339, %341 : vector<8x32xf32>
    %345 = arith.addf %343, %344 : vector<8x32xf32>
    %346 = math.tanh %345 : vector<8x32xf32>
    %347 = arith.mulf %342, %346 : vector<8x32xf32>
    %c7_i32 = arith.constant 7 : i32
    %348 = arith.index_cast %c7_i32 : i32 to index
    %c0_62 = arith.constant 0 : index
    %c0_63 = arith.constant 0 : index
    %349 = vector.load %arg10[%348, %c0_62, %c0_63] : memref<8x8x128xbf16, #tpu.memory_space<vmem>>, vector<1x8x128xbf16>
    %350 = vector.shape_cast %349 : vector<1x8x128xbf16> to vector<8x128xbf16>
    %351 = arith.extf %350 : vector<8x128xbf16> to vector<8x128xf32>
    %352 = arith.truncf %326 : vector<8x32xf32> to vector<8x32xbf16>
    %cst_64 = arith.constant dense<0.000000e+00> : vector<8x128xf32>
    %353 = tpu.matmul %352, %15, %cst_64 {dimension_numbers = #tpu.dot_dimension_numbers<[1], [0], [0], [1], [0, 0, 1, 1], [], []>} : vector<8x32xbf16>, vector<32x128xbf16>, vector<8x128xf32> -> vector<8x128xf32>
    %354 = arith.addf %351, %353 : vector<8x128xf32>
    %355 = arith.mulf %354, %28 : vector<8x128xf32>
    %356 = arith.negf %355 : vector<8x128xf32>
    %357 = math.exp %356 : vector<8x128xf32>
    %cst_65 = arith.constant 1.000000e+00 : f32
    %358 = vector.broadcast %cst_65 : f32 to vector<8x128xf32>
    %359 = arith.addf %358, %357 : vector<8x128xf32>
    %360 = arith.divf %358, %359 : vector<8x128xf32>
    %361 = arith.mulf %360, %28 : vector<8x128xf32>
    %362 = arith.addf %361, %31 : vector<8x128xf32>
    %363 = vector.extract_strided_slice %362 {offsets = [0, 0], sizes = [8, 32], strides = [1, 1]} : vector<8x128xf32> to vector<8x32xf32>
    %364 = vector.extract_strided_slice %362 {offsets = [0, 32], sizes = [8, 32], strides = [1, 1]} : vector<8x128xf32> to vector<8x32xf32>
    %365 = vector.extract_strided_slice %362 {offsets = [0, 64], sizes = [8, 32], strides = [1, 1]} : vector<8x128xf32> to vector<8x32xf32>
    %366 = vector.extract_strided_slice %362 {offsets = [0, 96], sizes = [8, 32], strides = [1, 1]} : vector<8x128xf32> to vector<8x32xf32>
    %367 = arith.mulf %364, %324 : vector<8x32xf32>
    %368 = arith.mulf %363, %365 : vector<8x32xf32>
    %369 = arith.addf %367, %368 : vector<8x32xf32>
    %370 = math.tanh %369 : vector<8x32xf32>
    %371 = arith.mulf %366, %370 : vector<8x32xf32>
    %372 = tpu.concatenate %371, %347 in 1 : vector<8x32xf32>, vector<8x32xf32> -> vector<8x64xf32>
    %373 = arith.truncf %372 : vector<8x64xf32> to vector<8x64xbf16>
    %cst_66 = arith.constant dense<0.000000e+00> : vector<8x128xf32>
    %374 = tpu.matmul %373, %16, %cst_66 {dimension_numbers = #tpu.dot_dimension_numbers<[1], [0], [0], [1], [0, 0, 1, 1], [], []>} : vector<8x64xbf16>, vector<64x128xbf16>, vector<8x128xf32> -> vector<8x128xf32>
    %375 = arith.addf %374, %19 : vector<8x128xf32>
    %376 = arith.mulf %375, %28 : vector<8x128xf32>
    %377 = arith.negf %376 : vector<8x128xf32>
    %378 = math.exp %377 : vector<8x128xf32>
    %cst_67 = arith.constant 1.000000e+00 : f32
    %379 = vector.broadcast %cst_67 : f32 to vector<8x128xf32>
    %380 = arith.addf %379, %378 : vector<8x128xf32>
    %381 = arith.divf %379, %380 : vector<8x128xf32>
    %382 = arith.mulf %381, %28 : vector<8x128xf32>
    %383 = arith.addf %382, %31 : vector<8x128xf32>
    %384 = vector.extract_strided_slice %383 {offsets = [0, 0], sizes = [8, 32], strides = [1, 1]} : vector<8x128xf32> to vector<8x32xf32>
    %385 = vector.extract_strided_slice %383 {offsets = [0, 32], sizes = [8, 32], strides = [1, 1]} : vector<8x128xf32> to vector<8x32xf32>
    %386 = vector.extract_strided_slice %383 {offsets = [0, 64], sizes = [8, 32], strides = [1, 1]} : vector<8x128xf32> to vector<8x32xf32>
    %387 = vector.extract_strided_slice %383 {offsets = [0, 96], sizes = [8, 32], strides = [1, 1]} : vector<8x128xf32> to vector<8x32xf32>
    %388 = arith.mulf %385, %345 : vector<8x32xf32>
    %389 = arith.mulf %384, %386 : vector<8x32xf32>
    %390 = arith.addf %388, %389 : vector<8x32xf32>
    %391 = math.tanh %390 : vector<8x32xf32>
    %392 = arith.mulf %387, %391 : vector<8x32xf32>
    %c8_i32_68 = arith.constant 8 : i32
    %393 = arith.truncf %392 : vector<8x32xf32> to vector<8x32xbf16>
    %c0_69 = arith.constant 0 : index
    %c0_70 = arith.constant 0 : index
    %394 = vector.load %arg7[%c0_69, %c0_70] : memref<32x128xbf16, #tpu.memory_space<vmem>>, vector<32x128xbf16>
    %cst_71 = arith.constant dense<0.000000e+00> : vector<8x128xf32>
    %395 = tpu.matmul %393, %394, %cst_71 {dimension_numbers = #tpu.dot_dimension_numbers<[1], [0], [0], [1], [0, 0, 1, 1], [], []>} : vector<8x32xbf16>, vector<32x128xbf16>, vector<8x128xf32> -> vector<8x128xf32>
    %c0_72 = arith.constant 0 : index
    %c0_73 = arith.constant 0 : index
    %396 = vector.load %arg8[%c0_72, %c0_73] : memref<1x128xf32, #tpu.memory_space<vmem>>, vector<1x128xf32>
    %397 = vector.broadcast %396 : vector<1x128xf32> to vector<8x128xf32>
    %398 = arith.addf %395, %397 : vector<8x128xf32>
    %399 = arith.negf %398 : vector<8x128xf32>
    %400 = math.exp %399 : vector<8x128xf32>
    %cst_74 = arith.constant 1.000000e+00 : f32
    %401 = vector.broadcast %cst_74 : f32 to vector<8x128xf32>
    %402 = arith.addf %401, %400 : vector<8x128xf32>
    %403 = arith.divf %401, %402 : vector<8x128xf32>
    %c0_75 = arith.constant 0 : index
    %c0_76 = arith.constant 0 : index
    %404 = vector.load %arg9[%c0_75, %c0_76] : memref<8x128xf32, #tpu.memory_space<vmem>>, vector<8x128xf32>
    tpu.vector_store %arg9[%c0_75, %c0_76], %403 {strides = array<i32>} : memref<8x128xf32, #tpu.memory_space<vmem>>, vector<8x128xf32>,
    return
  }
  func.func @transform_0(%arg0: i32) -> (i32, i32, i32) {
    %c0_i32 = arith.constant 0 : i32
    %c0_i32_0 = arith.constant 0 : i32
    %c0_i32_1 = arith.constant 0 : i32
    return %c0_i32, %arg0, %c0_i32_0 : i32, i32, i32
  }
  func.func @transform_1(%arg0: i32) -> (i32, i32) {
    %c0_i32 = arith.constant 0 : i32
    %c0_i32_0 = arith.constant 0 : i32
    %c0_i32_1 = arith.constant 0 : i32
    return %c0_i32, %c0_i32_0 : i32, i32
  }
  func.func @transform_2(%arg0: i32) -> (i32, i32) {
    %c0_i32 = arith.constant 0 : i32
    %c0_i32_0 = arith.constant 0 : i32
    %c0_i32_1 = arith.constant 0 : i32
    return %c0_i32, %c0_i32_0 : i32, i32
  }
  func.func @transform_3(%arg0: i32) -> (i32, i32) {
    %c0_i32 = arith.constant 0 : i32
    %c0_i32_0 = arith.constant 0 : i32
    %c0_i32_1 = arith.constant 0 : i32
    return %c0_i32, %c0_i32_0 : i32, i32
  }
  func.func @transform_4(%arg0: i32) -> (i32, i32) {
    %c0_i32 = arith.constant 0 : i32
    %c0_i32_0 = arith.constant 0 : i32
    %c0_i32_1 = arith.constant 0 : i32
    return %c0_i32, %c0_i32_0 : i32, i32
  }
  func.func @transform_5(%arg0: i32) -> (i32, i32) {
    %c0_i32 = arith.constant 0 : i32
    %c0_i32_0 = arith.constant 0 : i32
    %c0_i32_1 = arith.constant 0 : i32
    return %c0_i32, %c0_i32_0 : i32, i32
  }
  func.func @transform_6(%arg0: i32) -> (i32, i32) {
    %c0_i32 = arith.constant 0 : i32
    %c0_i32_0 = arith.constant 0 : i32
    %c0_i32_1 = arith.constant 0 : i32
    return %c0_i32, %c0_i32_0 : i32, i32
  }
  func.func @transform_7(%arg0: i32) -> (i32, i32) {
    %c0_i32 = arith.constant 0 : i32
    %c0_i32_0 = arith.constant 0 : i32
    %c0_i32_1 = arith.constant 0 : i32
    return %c0_i32, %c0_i32_0 : i32, i32
  }
  func.func @transform_8(%arg0: i32) -> (i32, i32) {
    %c0_i32 = arith.constant 0 : i32
    %c0_i32_0 = arith.constant 0 : i32
    return %arg0, %c0_i32 : i32, i32
  }
}

</mosaic_0001>

<bundles_post_ra>
// kernel: tpu_custom_call.1
= control target key start
LH: loop header
LB: loop body
LE: loop exit
PB: predicated region body
PF: predicated region fallthrough
CT: control target
= control target key end

     0   :  { %13 = vsyncpa [#allocation4], 0  ;;  %s2746_s0 = inlined_call_operand.hbm [shape: bf16[8,8,32], index: 0, kind: input, shape index: {}]   ;;  %s2747_s1 = inlined_call_operand.hbm [shape: bf16[32,128], index: 1, kind: input, shape index: {}]   ;;  %s2748_s2 = inlined_call_operand.hbm [shape: bf16[32,128], index: 2, kind: input, shape index: {}]   ;;  %s2749_s3 = inlined_call_operand.vmem [shape: f32[1,128], index: 3, kind: input, shape index: {}]   ;;  %s2750_s4 = inlined_call_operand.hbm [shape: bf16[64,128], index: 4, kind: input, shape index: {}]   ;;  %s2751_s5 = inlined_call_operand.vmem [shape: f32[1,128], index: 5, kind: input, shape index: {}]   ;;  %s2752_s6 = inlined_call_operand.vmem [shape: bf16[32,128], index: 6, kind: input, shape index: {}]   ;;  %s2753_s7 = inlined_call_operand.vmem [shape: f32[1,128], index: 7, kind: input, shape index: {}]   ;;  %s2754_s8 = inlined_call_operand.hbm [shape: f32[8,128], index: 8, kind: output, shape index: {}]  }
   0x1   :  { %14 = vsyncpa [#allocation7], 0 }
   0x2   :  { %15 = vsyncpa [#allocation10], 0 }
   0x3   :  { %16 = vsyncpa [#allocation5], 0  ;;  %s2206_s27 = smov [#allocation6]   ;;  %s2207_s29 = smov [#allocation3]  }
   0x4   :  { %s34_s28 = sshll.u32 %s2206_s27, 4  ;;  %s22_s30 = sshll.u32 %s2207_s29, 4  ;;  %s35_s28 = int_to_ptr.vmem [resolvable:$true] %s34_s28  ;;  %s2263_s30 = int_to_ptr.vmem [resolvable:$true] %s22_s30 }
   0x5   :  { %s2088_s11 = scalar_lea.hbm %s2747_s1, 256 }
   0x6   :  { %p2089_p0 = scmp.ne.s32.totalorder %s2747_s1, %s2088_s11  ;;  %p2092_p1 = scmp.lt.u32.totalorder %s2088_s11, %s2747_s1 }
   0x8   :  { %p2094_p2 = pnand %p2092_p1, %p2089_p0 }
   0xa   :  { %2097 = shalt.err (!%p2094_p2)
}
   0xb   :  { %s2098_s16 = scalar_lea.vmem %s35_s28, 256  ;;  %p2103_p4 = scmp.lt.s32.totalorder %s35_s28, %s35_s28 }
   0xc   :  { %p2099_p3 = scmp.ne.s32.totalorder %s35_s28, %s2098_s16  ;;  %p2104_p5 = scmp.lt.s32.totalorder %s2098_s16, %s2098_s16 }
   0xe   :  { %p2105_p6 = por %p2104_p5, %p2103_p4 }
  0x10   :  { %p2106_p7 = pnand %p2105_p6, %p2099_p3 }
  0x12   :  { %2109 = shalt.err (!%p2106_p7)
}
  0x13   :  { %s2208_s17 = smov 64   ;;  %s2209_s18 = smov 4  }
  0x14   :  { %40 = dma.hbm_to_vmem [thread:$0]  %s2747_s1, 256, %s35_s28, [#allocation7], %s2208_s17, %s2208_s17, %s2209_s18  }
  0x15   :  { %s2110_s23 = scalar_lea.hbm %s2746_s0, 512 }
  0x16   :  { %p2111_p8 = scmp.ne.s32.totalorder %s2746_s0, %s2110_s23  ;;  %p2114_p9 = scmp.lt.u32.totalorder %s2110_s23, %s2746_s0 }
  0x18   :  { %p2116_p10 = pnand %p2114_p9, %p2111_p8 }
  0x1a   :  { %2119 = shalt.err (!%p2116_p10)
}
  0x1b   :  { %s2120_s29 = scalar_lea.vmem %s2263_s30, 512  ;;  %p2125_p12 = scmp.lt.s32.totalorder %s2263_s30, %s2263_s30 }
  0x1c   :  { %p2121_p11 = scmp.ne.s32.totalorder %s2263_s30, %s2120_s29  ;;  %p2126_p13 = scmp.lt.s32.totalorder %s2120_s29, %s2120_s29 }
  0x1e   :  { %p2127_p0 = por %p2126_p13, %p2125_p12 }
  0x20   :  { %p2128_p1 = pnand %p2127_p0, %p2121_p11 }
  0x22   :  { %2131 = shalt.err (!%p2128_p1)
}
  0x23   :  { %28 = dma.hbm_to_vmem [thread:$0]  %s2746_s0, 512, %s2263_s30, [#allocation4], %s2208_s17, %s2208_s17, %s2209_s18  }
  0x24   :  { %s2210_s9 = smov [#allocation8]   ;;  %s2211_s11 = smov [#allocation9]  }
  0x25   :  { %s46_s10 = sshll.u32 %s2210_s9, 4  ;;  %s60_s12 = sshll.u32 %s2211_s11, 4  ;;  %s47_s10 = int_to_ptr.vmem [resolvable:$true] %s46_s10  ;;  %s2300_s12 = int_to_ptr.vmem [resolvable:$true] %s60_s12 }
  0x26   :  { %s2132_s15 = scalar_lea.hbm %s2748_s2, 256 }
  0x27   :  { %p2133_p2 = scmp.ne.s32.totalorder %s2748_s2, %s2132_s15  ;;  %p2136_p3 = scmp.lt.u32.totalorder %s2132_s15, %s2748_s2 }
  0x29   :  { %p2138_p4 = pnand %p2136_p3, %p2133_p2 }
  0x2b   :  { %2141 = shalt.err (!%p2138_p4)
}
  0x2c   :  { %s2142_s0 = scalar_lea.vmem %s47_s10, 256  ;;  %p2147_p6 = scmp.lt.s32.totalorder %s47_s10, %s47_s10 }
  0x2d   :  { %p2143_p5 = scmp.ne.s32.totalorder %s47_s10, %s2142_s0  ;;  %p2148_p7 = scmp.lt.s32.totalorder %s2142_s0, %s2142_s0 }
  0x2f   :  { %p2149_p8 = por %p2148_p7, %p2147_p6 }
  0x31   :  { %p2150_p9 = pnand %p2149_p8, %p2143_p5 }
  0x33   :  { %2153 = shalt.err (!%p2150_p9)
}
  0x34   :  { %52 = dma.hbm_to_vmem [thread:$0]  %s2748_s2, 256, %s47_s10, [#allocation7], %s2208_s17, %s2208_s17, %s2209_s18  }
  0x35   :  { %s2154_s25 = scalar_lea.hbm %s2750_s4, 512 }
  0x36   :  { %p2155_p10 = scmp.ne.s32.totalorder %s2750_s4, %s2154_s25  ;;  %p2158_p11 = scmp.lt.u32.totalorder %s2154_s25, %s2750_s4 }
  0x38   :  { %p2160_p12 = pnand %p2158_p11, %p2155_p10 }
  0x3a   :  { %2163 = shalt.err (!%p2160_p12)
}
  0x3b   :  { %s2164_s28 = scalar_lea.vmem %s2300_s12, 512  ;;  %p2169_p0 = scmp.lt.s32.totalorder %s2300_s12, %s2300_s12 }
  0x3c   :  { %p2165_p13 = scmp.ne.s32.totalorder %s2300_s12, %s2164_s28  ;;  %p2170_p1 = scmp.lt.s32.totalorder %s2164_s28, %s2164_s28 }
  0x3e   :  { %p2171_p2 = por %p2170_p1, %p2169_p0 }
  0x40   :  { %p2172_p3 = pnand %p2171_p2, %p2165_p13 }
  0x42   :  { %2175 = shalt.err (!%p2172_p3)
}
  0x43   :  { %66 = dma.hbm_to_vmem [thread:$0]  %s2750_s4, 512, %s2300_s12, [#allocation10], %s2208_s17, %s2208_s17, %s2209_s18  }
  0x44   :  { %2198 = dma.done.wait [#allocation4], 512  }
  0x45   :  { %2199 = vsyncadd [#allocation4], 4294966784 }
  0x46   :  { %2200 = dma.done.wait [#allocation7], 512  }
  0x47   :  { %2201 = vsyncadd [#allocation7], 4294966784 }
  0x48   :  { %2202 = dma.done.wait [#allocation10], 512  }
  0x49   :  { %2203 = vsyncadd [#allocation10], 4294966784  ;;  %v2212_v0 = vmov 0.0   ;;  %vm2213_vm0 = vmmov 0   ;;  %v1969_v1 = vld [vmem:[#allocation6] sm:$0xff]   ;;  %v1970_v2 = vld [vmem:[#allocation6 + $0x8] sm:$0xff]   ;;  %v250_v15 = vlaneseq }
  0x4a   :  { %1789 = vmatprep.subr.bf16.mxu1 %v2212_v0  ;;  %1793 = vmatprep.mubr.msk.bf16.mxu1 %vm2213_vm0, %v2212_v0  ;;  %vm137_vm1 = vcmask 261120   ;;  %v1971_v3 = vld [vmem:[#allocation3] sm:$0xff]   ;;  %v1972_v4 = vld [vmem:[#allocation3 + $0x8] sm:$0xff]   ;;  %v2341_v5 = vld [vmem:[#allocation8] sm:$0xff]   ;;  %v2214_v7 = vmov 0   ;;  %v2215_v27 = vmov 1.0  }
  0x4b   :  { %1777 = vmatprep.subr.bf16.mxu0 %v1969_v1  ;;  %1781 = vmatprep.mubr.msk.bf16.mxu0 %vm137_vm1, %v1971_v3  ;;  %v2343_v6 = vld [vmem:[#allocation8 + $0x8] sm:$0xff]   ;;  %v2360_v9 = vld [vmem:[%s2749_s3] ss:$0 sm:$0xff]  ;;  %v251_v24 = vand.u32 127, %v250_v15  ;;  %s2216_s3 = smov 32   ;;  %v1977_v44 = vld [vmem:[#allocation3 + $0x10] sm:$0xff]  }
  0x4c   :  { %1778 = vmatpush3.bf16.msra.mxu0 %v1969_v1  ;;  %1790 = vmatpush3.bf16.msra.mxu1 %v2341_v5  ;;  %v2382_v43 = vld [vmem:[#allocation9] sm:$0xff]   ;;  %v1978_v45 = vld [vmem:[#allocation3 + $0x18] sm:$0xff]   ;;  %v2385_v46 = vld [vmem:[#allocation9 + $0x8] sm:$0xff]   ;;  %vm371_vm5 = vcmask 523264  }
  0x4d   :  { %1779 = vmatprep.subr.bf16.mxu0 %v1970_v2  ;;  %1791 = vmatprep.subr.bf16.mxu1 %v2212_v0  ;;  %vm252_vm2 = vcmp.ge.s32.totalorder %v251_v24, 64  ;;  %vm253_vm3 = vcmp.lt.s32.totalorder %v251_v24, 96  ;;  %v2393_v47 = vld [vmem:[#allocation9 + $0x10] sm:$0xff]   ;;  %v2399_v49 = vld [vmem:[#allocation9 + $0x18] sm:$0xff]  }
  0x4e   :  { %vm254_vm4 = vmand %vm252_vm2, %vm253_vm3 }
  0x4f   :  { %v2369_v28 = vsel %vm254_vm4, 2.0, %v2215_v27  ;;  %v2373_v35 = vsel %vm254_vm4, -1.0, %v2212_v0 }
  0x50   :  { %1780 = vmatpush3.bf16.msra.mxu0 %v1970_v2  ;;  %1792 = vmatpush3.bf16.msra.mxu1 %v2343_v6 }
  0x51   :  { %1797 = vmatprep.subr.bf16.mxu0 %v2212_v0  ;;  %1809 = vmatprep.subr.bf16.mxu1 %v2212_v0 }
  0x53   :  { %1782 = vmatmul.mubr.msk.bf16.vlgmr.msra.gmra.mrb[0].mxu0 %vm137_vm1, %v1972_v4  ;;  %1794 = vmatmul.mubr.bf16.vlgmr.msra.gmra.mrb[0].mxu1 %v2214_v7  ;;  %v2432_v7 = vld [vmem:[%s2751_s5] ss:$0 sm:$0xff] }
  0x54   :  { %1810 = vmatpush3.bf16.msra.mxu1 %v2341_v5  ;;  %1813 = vmatprep.mubr.msk.bf16.mxu1 %vm2213_vm0, %v2212_v0 }
  0x55   :  { %1811 = vmatprep.subr.bf16.mxu1 %v2212_v0  ;;  %1798 = vmatpush3.bf16.msra.mxu0 %v2382_v43 }
  0x56   :  { %1785 = vmatprep.mubr.msk.bf16.mxu0 %vm137_vm1, %v1977_v44  ;;  %1799 = vmatprep.subr.bf16.mxu0 %v2212_v0 }
  0x58   :  { %1812 = vmatpush3.bf16.msra.mxu1 %v2343_v6 }
  0x59   :  { %1817 = vmatprep.subr.bf16.mxu1 %v2212_v0  ;;  %1800 = vmatpush3.bf16.msra.mxu0 %v2385_v46 }
  0x5a   :  { %1801 = vmatprep.subr.bf16.mxu0 %v2212_v0 }
  0x5b   :  { %1786 = vmatmul.mubr.msk.bf16.gmra.mrb[4].mxu0 %vm137_vm1, %v1978_v45 }
  0x5c   :  { %1805 = vmatprep.mubr.msk.bf16.mxu0 %vm2213_vm0, %v2212_v0 }
  0x5d   :  { %1802 = vmatpush3.bf16.msra.mxu0 %v2393_v47 }
  0x5e   :  { %1803 = vmatprep.subr.bf16.mxu0 %v2212_v0 }
  0x61   :  { %1804 = vmatpush3.bf16.msra.mxu0 %v2399_v49 }
  0x62   :  { %1829 = vmatprep.subr.bf16.mxu0 %v2212_v0 }
 0x126   :  { %v1783_v8 = vpop.f32.mrb[0].mxu0  ;;  %v308_v16 = vpop.f32.mrb[0].mxu1 }
 0x127   :  { %v184_v10 = vpop.f32.mrb[1].mxu0  ;;  %v193_v12 = vadd.f32 %v1783_v8, %v2360_v9  ;;  %v1795_v19 = vpop.f32.mrb[1].mxu1 }
 0x128   :  { %v1784_v11 = vpop.f32.mrb[2].mxu0  ;;  %v185_v17 = vadd.f32 %v2360_v9, %v184_v10  ;;  %v311_v21 = vpop.f32.mrb[2].mxu1 }
 0x129   :  { %v196_v13 = vadd.f32 %v1784_v11, %v2360_v9  ;;  %v187_v14 = vpop.f32.mrb[3].mxu0  ;;  %v1796_v23 = vpop.f32.mrb[3].mxu1 }
 0x12a   :  { %v188_v18 = vadd.f32 %v2360_v9, %v187_v14 }
 0x12b   :  { %v1689_v20 = vpack.c.bf16 %v196_v13, %v193_v12 }
 0x12c   :  { %v1684_v22 = vpack.c.bf16 %v188_v18, %v185_v17 }
 0x12d   :  { %1701 = vst [vmem:[#allocation2 + $0x8] sm:$0xff] %v1689_v20  }
 0x12e   :  { %1685 = vst [vmem:[#allocation2] sm:$0xff] %v1684_v22   ;;  %v1787_v53 = vpop.f32.mrb[4].mxu0 }
 0x12f   :  { %v209_v54 = vadd.f32 %v1787_v53, %v2360_v9  ;;  %v200_v55 = vpop.f32.mrb[5].mxu0 }
 0x130   :  { %v201_v56 = vadd.f32 %v2360_v9, %v200_v55  ;;  %v1788_v57 = vpop.f32.mrb[6].mxu0 }
 0x131   :  { %v212_v58 = vadd.f32 %v1788_v57, %v2360_v9  ;;  %v203_v59 = vpop.f32.mrb[7].mxu0 }
 0x132   :  { %v204_v60 = vadd.f32 %v2360_v9, %v203_v59 }
 0x133   :  { %v1699_v61 = vpack.c.bf16 %v212_v58, %v209_v54 }
 0x134   :  { %v1694_v62 = vpack.c.bf16 %v204_v60, %v201_v56  ;;  %v2476_v60 = vld [vmem:[#allocation2 + $0x8] sm:$0xff]  }
 0x135   :  { %v2366_v25 = vld [vmem:[#allocation2] sm:$0xff]   ;;  %1703 = vst [vmem:[#allocation2 + $0x18] sm:$0xff] %v1699_v61   ;;  %v599_v61 = vunpack.c.l.bf16 %v2476_v60 }
 0x136   :  { %v258_v26 = vunpack.c.l.bf16 %v2366_v25  ;;  %1702 = vst [vmem:[#allocation2 + $0x10] sm:$0xff] %v1694_v62   ;;  %v443_v4 = vunpack.c.h.bf16 %v2366_v25 }
 0x138   :  { %v314_v29 = vadd.f32 %v308_v16, %v258_v26 }
 0x13a   :  { %v315_v30 = vmul.f32 %v314_v29, %v2369_v28 }
 0x13c   :  { %v1641_v31 = vmul.f32 -1.442695, %v315_v30 }
 0x13e   :  { %1983 = vpow2.f32 %v1641_v31 }
 0x148   :  { %v1984_v32 = vpop.eup %1983 }
 0x149   :  { %v319_v33 = vadd.f32 1.0, %v1984_v32 }
 0x14b   :  { %1985 = vrcp.f32 %v319_v33 }
 0x155   :  { %v1986_v34 = vpop.eup %1985 }
 0x156   :  { %v322_v36 = vmul.f32 %v1986_v34, %v2369_v28 }
 0x158   :  { %v323_v37 = vadd.f32 %v322_v36, %v2373_v35 }
 0x15a   :  { %326 = vrot.lane.b32.xlu0 %v323_v37, %s2208_s17  ;;  %v324_v40 = vmul.f32 0.0, %v323_v37 }
 0x1cc   :  { %v327_v38 = vpop.permute.xlu0 %326 }
 0x1cd   :  { %v329_v39 = vmul.f32 %v327_v38, %v323_v37 }
 0x1cf   :  { %331 = vrot.lane.b32.xlu0 %v329_v39, %s2216_s3 }
 0x241   :  { %v332_v41 = vpop.permute.xlu0 %331 }
 0x242   :  { %v2379_v42 = vadd.f32 %v332_v41, %v324_v40 }
 0x244   :  { %1987 = vtanh.f32 %v2379_v42 }
 0x24e   :  { %v1988_v48 = vpop.eup %1987 }
 0x24f   :  { %337 = vrot.lane.b32.xlu1 %v1988_v48, %s2208_s17 }
 0x2c1   :  { %v338_v50 = vpop.permute.xlu1 %337 }
 0x2c2   :  { %v340_v51 = vmul.f32 %v338_v50, %v323_v37 }
 0x2c4   :  { %v444_v52 = vpack.c.bf16 %v340_v51, %v340_v51  ;;  %342 = vrot.lane.b32.xlu1 %v340_v51, %s2216_s3 }
 0x2c6   :  { %446 = vrot.lane.b32.xlu0 %v444_v52, %s2216_s3 }
 0x336   :  { %v343_v63 = vpop.permute.xlu1 %342 }
 0x337   :  { %v345_v1 = vsel %vm137_vm1, %v343_v63, 0.0 }
 0x338   :  { %v346_v2 = vpack.c.bf16 %v345_v1, %v345_v1  ;;  %v447_v3 = vpop.permute.xlu0 %446 }
 0x339   :  { %1814 = vmatmul.mubr.msk.bf16.vlgmr.msra.gmra.mrb[4].mxu1 %vm137_vm1, %v447_v3 }
 0x33a   :  { %1806 = vmatmul.mubr.msk.bf16.vlgmr.msra.gmra.mrb[8].mxu0 %vm371_vm5, %v346_v2  ;;  %1818 = vmatpush3.bf16.msra.mxu1 %v2382_v43 }
 0x33b   :  { %1819 = vmatprep.subr.bf16.mxu1 %v2212_v0  ;;  %1830 = vmatpush3.bf16.msra.mxu0 %v2341_v5 }
 0x33c   :  { %1831 = vmatprep.subr.bf16.mxu0 %v2212_v0  ;;  %1825 = vmatprep.mubr.msk.bf16.mxu1 %vm2213_vm0, %v2212_v0 }
 0x33d   :  { %1833 = vmatprep.mubr.msk.bf16.mxu0 %vm2213_vm0, %v2212_v0 }
 0x33e   :  { %1820 = vmatpush3.bf16.msra.mxu1 %v2385_v46 }
 0x33f   :  { %1821 = vmatprep.subr.bf16.mxu1 %v2212_v0  ;;  %1832 = vmatpush3.bf16.msra.mxu0 %v2343_v6 }
 0x340   :  { %1837 = vmatprep.subr.bf16.mxu0 %v2212_v0 }
 0x342   :  { %1822 = vmatpush3.bf16.msra.mxu1 %v2393_v47 }
 0x343   :  { %1823 = vmatprep.subr.bf16.mxu1 %v2212_v0 }
 0x346   :  { %1824 = vmatpush3.bf16.msra.mxu1 %v2399_v49 }
 0x347   :  { %1849 = vmatprep.subr.bf16.mxu1 %v2212_v0 }
 0x40c   :  { %v485_v8 = vpop.f32.mrb[4].mxu1 }
 0x40d   :  { %v491_v9 = vadd.f32 %v485_v8, %v443_v4  ;;  %v409_v10 = vpop.f32.mrb[8].mxu0  ;;  %v1815_v11 = vpop.f32.mrb[5].mxu1 }
 0x40e   :  { %v410_v12 = vadd.f32 %v2432_v7, %v409_v10  ;;  %v1807_v13 = vpop.f32.mrb[9].mxu0  ;;  %v488_v14 = vpop.f32.mrb[6].mxu1 }
 0x40f   :  { %v492_v15 = vmul.f32 %v491_v9, %v2369_v28  ;;  %v412_v16 = vpop.f32.mrb[10].mxu0  ;;  %v1816_v17 = vpop.f32.mrb[7].mxu1 }
 0x410   :  { %v415_v18 = vmul.f32 %v410_v12, %v2369_v28  ;;  %v1808_v19 = vpop.f32.mrb[11].mxu0 }
 0x411   :  { %v1649_v20 = vmul.f32 -1.442695, %v492_v15 }
 0x412   :  { %v1647_v21 = vmul.f32 -1.442695, %v415_v18 }
 0x413   :  { %1989 = vpow2.f32 %v1649_v20 }
 0x414   :  { %1991 = vpow2.f32 %v1647_v21 }
 0x41d   :  { %v1990_v22 = vpop.eup %1989 }
 0x41e   :  { %v1992_v23 = vpop.eup %1991  ;;  %v496_v24 = vadd.f32 1.0, %v1990_v22 }
 0x41f   :  { %v419_v25 = vadd.f32 1.0, %v1992_v23 }
 0x420   :  { %1993 = vrcp.f32 %v496_v24 }
 0x421   :  { %1995 = vrcp.f32 %v419_v25 }
 0x42a   :  { %v1994_v26 = vpop.eup %1993 }
 0x42b   :  { %v1996_v27 = vpop.eup %1995  ;;  %v499_v29 = vmul.f32 %v1994_v26, %v2369_v28 }
 0x42c   :  { %v422_v30 = vmul.f32 %v1996_v27, %v2369_v28 }
 0x42d   :  { %v500_v31 = vadd.f32 %v499_v29, %v2373_v35 }
 0x42e   :  { %v423_v32 = vadd.f32 %v422_v30, %v2373_v35 }
 0x42f   :  { %503 = vrot.lane.b32.xlu0 %v500_v31, %s2208_s17  ;;  %v501_v38 = vmul.f32 %v500_v31, %v2379_v42 }
 0x430   :  { %426 = vrot.lane.b32.xlu1 %v423_v32, %s2208_s17  ;;  %v424_v40 = vmul.f32 0.0, %v423_v32 }
 0x4a1   :  { %v504_v33 = vpop.permute.xlu0 %503 }
 0x4a2   :  { %v506_v34 = vmul.f32 %v504_v33, %v500_v31  ;;  %v427_v36 = vpop.permute.xlu1 %426 }
 0x4a3   :  { %v429_v37 = vmul.f32 %v427_v36, %v423_v32 }
 0x4a4   :  { %508 = vrot.lane.b32.xlu0 %v506_v34, %s2216_s3 }
 0x4a5   :  { %431 = vrot.lane.b32.xlu1 %v429_v37, %s2216_s3 }
 0x516   :  { %v509_v39 = vpop.permute.xlu0 %508 }
 0x517   :  { %v2446_v41 = vadd.f32 %v509_v39, %v501_v38  ;;  %v432_v44 = vpop.permute.xlu1 %431 }
 0x518   :  { %v2448_v45 = vadd.f32 %v432_v44, %v424_v40 }
 0x519   :  { %1997 = vtanh.f32 %v2446_v41 }
 0x51a   :  { %1999 = vtanh.f32 %v2448_v45 }
 0x523   :  { %v1998_v48 = vpop.eup %1997 }
 0x524   :  { %v2000_v50 = vpop.eup %1999  ;;  %514 = vrot.lane.b32.xlu0 %v1998_v48, %s2208_s17 }
 0x525   :  { %437 = vrot.lane.b32.xlu1 %v2000_v50, %s2208_s17 }
 0x596   :  { %v515_v51 = vpop.permute.xlu0 %514 }
 0x597   :  { %v517_v52 = vmul.f32 %v515_v51, %v500_v31  ;;  %v438_v42 = vpop.permute.xlu1 %437 }
 0x598   :  { %v440_v53 = vmul.f32 %v438_v42, %v423_v32 }
 0x599   :  { %519 = vrot.lane.b32.xlu1 %v517_v52, %s2216_s3  ;;  %v600_v54 = vpack.c.bf16 %v517_v52, %v517_v52 }
 0x59a   :  { %523 = vrot.lane.b32.xlu0 %v440_v53, %s2208_s17 }
 0x59d   :  { %602 = vrot.lane.b32.xlu1 %v600_v54, %s2216_s3 }
 0x60b   :  { %v520_v55 = vpop.permute.xlu1 %519 }
 0x60c   :  { %v524_v56 = vpop.permute.xlu0 %523 }
 0x60d   :  { %v526_v57 = vsel %vm137_vm1, %v520_v55, %v524_v56  ;;  %v755_v55 = vunpack.c.h.bf16 %v2476_v60 }
 0x60e   :  { %v527_v58 = vpack.c.bf16 %v526_v57, %v526_v57 }
 0x60f   :  { %v603_v59 = vpop.permute.xlu1 %602 }
 0x610   :  { %1826 = vmatmul.mubr.msk.bf16.vlgmr.msra.gmra.mrb[8].mxu1 %vm371_vm5, %v527_v58  ;;  %1834 = vmatmul.mubr.msk.bf16.vlgmr.msra.gmra.mrb[12].mxu0 %vm137_vm1, %v603_v59 }
 0x611   :  { %1838 = vmatpush3.bf16.msra.mxu0 %v2382_v43  ;;  %1850 = vmatpush3.bf16.msra.mxu1 %v2341_v5 }
 0x612   :  { %1839 = vmatprep.subr.bf16.mxu0 %v2212_v0  ;;  %1851 = vmatprep.subr.bf16.mxu1 %v2212_v0 }
 0x613   :  { %1845 = vmatprep.mubr.msk.bf16.mxu0 %vm2213_vm0, %v2212_v0  ;;  %1853 = vmatprep.mubr.msk.bf16.mxu1 %vm2213_vm0, %v2212_v0 }
 0x615   :  { %1840 = vmatpush3.bf16.msra.mxu0 %v2385_v46  ;;  %1852 = vmatpush3.bf16.msra.mxu1 %v2343_v6 }
 0x616   :  { %1841 = vmatprep.subr.bf16.mxu0 %v2212_v0  ;;  %1857 = vmatprep.subr.bf16.mxu1 %v2212_v0 }
 0x619   :  { %1842 = vmatpush3.bf16.msra.mxu0 %v2393_v47 }
 0x61a   :  { %1843 = vmatprep.subr.bf16.mxu0 %v2212_v0 }
 0x61d   :  { %1844 = vmatpush3.bf16.msra.mxu0 %v2399_v49 }
 0x61e   :  { %1869 = vmatprep.subr.bf16.mxu0 %v2212_v0 }
 0x6e3   :  { %v565_v62 = vpop.f32.mrb[8].mxu1  ;;  %v641_v63 = vpop.f32.mrb[12].mxu0 }
 0x6e4   :  { %v566_v1 = vadd.f32 %v2432_v7, %v565_v62  ;;  %v647_v2 = vadd.f32 %v641_v63, %v599_v61  ;;  %v1827_v3 = vpop.f32.mrb[9].mxu1  ;;  %v1835_v4 = vpop.f32.mrb[13].mxu0 }
 0x6e5   :  { %v568_v8 = vpop.f32.mrb[10].mxu1  ;;  %v644_v9 = vpop.f32.mrb[14].mxu0 }
 0x6e6   :  { %v571_v10 = vmul.f32 %v566_v1, %v2369_v28  ;;  %v648_v11 = vmul.f32 %v647_v2, %v2369_v28  ;;  %v1828_v12 = vpop.f32.mrb[11].mxu1  ;;  %v1836_v13 = vpop.f32.mrb[15].mxu0 }
 0x6e8   :  { %v1651_v14 = vmul.f32 -1.442695, %v571_v10  ;;  %v1653_v15 = vmul.f32 -1.442695, %v648_v11 }
 0x6ea   :  { %2001 = vpow2.f32 %v1651_v14 }
 0x6eb   :  { %2003 = vpow2.f32 %v1653_v15 }
 0x6f4   :  { %v2002_v16 = vpop.eup %2001 }
 0x6f5   :  { %v2004_v17 = vpop.eup %2003  ;;  %v575_v18 = vadd.f32 1.0, %v2002_v16 }
 0x6f6   :  { %v652_v19 = vadd.f32 1.0, %v2004_v17 }
 0x6f7   :  { %2005 = vrcp.f32 %v575_v18 }
 0x6f8   :  { %2007 = vrcp.f32 %v652_v19 }
 0x701   :  { %v2006_v20 = vpop.eup %2005 }
 0x702   :  { %v2008_v21 = vpop.eup %2007  ;;  %v578_v22 = vmul.f32 %v2006_v20, %v2369_v28 }
 0x703   :  { %v655_v23 = vmul.f32 %v2008_v21, %v2369_v28 }
 0x704   :  { %v579_v24 = vadd.f32 %v578_v22, %v2373_v35 }
 0x705   :  { %v656_v25 = vadd.f32 %v655_v23, %v2373_v35 }
 0x706   :  { %582 = vrot.lane.b32.xlu0 %v579_v24, %s2208_s17  ;;  %v580_v31 = vmul.f32 %v579_v24, %v2448_v45 }
 0x707   :  { %659 = vrot.lane.b32.xlu1 %v656_v25, %s2208_s17  ;;  %v657_v32 = vmul.f32 %v656_v25, %v2446_v41 }
 0x778   :  { %v583_v26 = vpop.permute.xlu0 %582 }
 0x779   :  { %v660_v27 = vpop.permute.xlu1 %659  ;;  %v585_v29 = vmul.f32 %v583_v26, %v579_v24 }
 0x77a   :  { %v662_v30 = vmul.f32 %v660_v27, %v656_v25 }
 0x77b   :  { %587 = vrot.lane.b32.xlu0 %v585_v29, %s2216_s3 }
 0x77c   :  { %664 = vrot.lane.b32.xlu1 %v662_v30, %s2216_s3 }
 0x7ed   :  { %v588_v33 = vpop.permute.xlu0 %587 }
 0x7ee   :  { %v665_v34 = vpop.permute.xlu1 %664  ;;  %v2492_v36 = vadd.f32 %v588_v33, %v580_v31 }
 0x7ef   :  { %v2494_v37 = vadd.f32 %v665_v34, %v657_v32 }
 0x7f0   :  { %2009 = vtanh.f32 %v2492_v36 }
 0x7f1   :  { %2011 = vtanh.f32 %v2494_v37 }
 0x7fa   :  { %v2010_v38 = vpop.eup %2009 }
 0x7fb   :  { %v2012_v39 = vpop.eup %2011  ;;  %593 = vrot.lane.b32.xlu0 %v2010_v38, %s2208_s17 }
 0x7fc   :  { %670 = vrot.lane.b32.xlu1 %v2012_v39, %s2208_s17 }
 0x86d   :  { %v594_v40 = vpop.permute.xlu0 %593 }
 0x86e   :  { %v671_v44 = vpop.permute.xlu1 %670  ;;  %v596_v45 = vmul.f32 %v594_v40, %v579_v24 }
 0x86f   :  { %v673_v41 = vmul.f32 %v671_v44, %v656_v25 }
 0x870   :  { %679 = vrot.lane.b32.xlu1 %v596_v45, %s2208_s17 }
 0x871   :  { %675 = vrot.lane.b32.xlu0 %v673_v41, %s2216_s3  ;;  %v756_v48 = vpack.c.bf16 %v673_v41, %v673_v41  ;;  %v2566_v41 = vld [vmem:[#allocation2 + $0x10] sm:$0xff]  }
 0x875   :  { %758 = vrot.lane.b32.xlu0 %v756_v48, %s2216_s3 }
 0x8e2   :  { %v680_v50 = vpop.permute.xlu1 %679 }
 0x8e3   :  { %v676_v51 = vpop.permute.xlu0 %675 }
 0x8e4   :  { %v682_v52 = vsel %vm137_vm1, %v676_v51, %v680_v50  ;;  %v911_v50 = vunpack.c.l.bf16 %v2566_v41 }
 0x8e5   :  { %v683_v42 = vpack.c.bf16 %v682_v52, %v682_v52 }
 0x8e7   :  { %1846 = vmatmul.mubr.msk.bf16.vlgmr.msra.gmra.mrb[16].mxu0 %vm371_vm5, %v683_v42  ;;  %v759_v53 = vpop.permute.xlu0 %758 }
 0x8e8   :  { %1854 = vmatmul.mubr.msk.bf16.vlgmr.msra.gmra.mrb[12].mxu1 %vm137_vm1, %v759_v53  ;;  %1870 = vmatpush3.bf16.msra.mxu0 %v2341_v5 }
 0x8e9   :  { %1858 = vmatpush3.bf16.msra.mxu1 %v2382_v43  ;;  %1871 = vmatprep.subr.bf16.mxu0 %v2212_v0 }
 0x8ea   :  { %1859 = vmatprep.subr.bf16.mxu1 %v2212_v0  ;;  %1865 = vmatprep.mubr.msk.bf16.mxu1 %vm2213_vm0, %v2212_v0 }
 0x8eb   :  { %1873 = vmatprep.mubr.msk.bf16.mxu0 %vm2213_vm0, %v2212_v0 }
 0x8ec   :  { %1872 = vmatpush3.bf16.msra.mxu0 %v2343_v6 }
 0x8ed   :  { %1860 = vmatpush3.bf16.msra.mxu1 %v2385_v46  ;;  %1877 = vmatprep.subr.bf16.mxu0 %v2212_v0 }
 0x8ee   :  { %1861 = vmatprep.subr.bf16.mxu1 %v2212_v0 }
 0x8f1   :  { %1862 = vmatpush3.bf16.msra.mxu1 %v2393_v47 }
 0x8f2   :  { %1863 = vmatprep.subr.bf16.mxu1 %v2212_v0 }
 0x8f5   :  { %1864 = vmatpush3.bf16.msra.mxu1 %v2399_v49 }
 0x8f6   :  { %1889 = vmatprep.subr.bf16.mxu1 %v2212_v0 }
 0x9ba   :  { %v721_v54 = vpop.f32.mrb[16].mxu0 }
 0x9bb   :  { %v722_v56 = vadd.f32 %v2432_v7, %v721_v54  ;;  %v1847_v57 = vpop.f32.mrb[17].mxu0  ;;  %v797_v58 = vpop.f32.mrb[12].mxu1 }
 0x9bc   :  { %v803_v59 = vadd.f32 %v797_v58, %v755_v55  ;;  %v724_v61 = vpop.f32.mrb[18].mxu0  ;;  %v1855_v62 = vpop.f32.mrb[13].mxu1 }
 0x9bd   :  { %v727_v63 = vmul.f32 %v722_v56, %v2369_v28  ;;  %v1848_v1 = vpop.f32.mrb[19].mxu0  ;;  %v800_v2 = vpop.f32.mrb[14].mxu1 }
 0x9be   :  { %v804_v3 = vmul.f32 %v803_v59, %v2369_v28  ;;  %v1856_v4 = vpop.f32.mrb[15].mxu1 }
 0x9bf   :  { %v1655_v8 = vmul.f32 -1.442695, %v727_v63 }
 0x9c0   :  { %v1657_v9 = vmul.f32 -1.442695, %v804_v3 }
 0x9c1   :  { %2013 = vpow2.f32 %v1655_v8 }
 0x9c2   :  { %2015 = vpow2.f32 %v1657_v9 }
 0x9cb   :  { %v2014_v10 = vpop.eup %2013 }
 0x9cc   :  { %v2016_v60 = vpop.eup %2015  ;;  %v731_v11 = vadd.f32 1.0, %v2014_v10 }
 0x9cd   :  { %v808_v12 = vadd.f32 1.0, %v2016_v60 }
 0x9ce   :  { %2017 = vrcp.f32 %v731_v11 }
 0x9cf   :  { %2019 = vrcp.f32 %v808_v12 }
 0x9d8   :  { %v2018_v13 = vpop.eup %2017 }
 0x9d9   :  { %v2020_v14 = vpop.eup %2019  ;;  %v734_v15 = vmul.f32 %v2018_v13, %v2369_v28 }
 0x9da   :  { %v811_v16 = vmul.f32 %v2020_v14, %v2369_v28 }
 0x9db   :  { %v735_v17 = vadd.f32 %v734_v15, %v2373_v35 }
 0x9dc   :  { %v812_v18 = vadd.f32 %v811_v16, %v2373_v35 }
 0x9dd   :  { %738 = vrot.lane.b32.xlu1 %v735_v17, %s2208_s17  ;;  %v736_v23 = vmul.f32 %v735_v17, %v2492_v36 }
 0x9de   :  { %815 = vrot.lane.b32.xlu0 %v812_v18, %s2208_s17  ;;  %v813_v25 = vmul.f32 %v812_v18, %v2494_v37 }
 0xa4f   :  { %v739_v19 = vpop.permute.xlu1 %738 }
 0xa50   :  { %v741_v20 = vmul.f32 %v739_v19, %v735_v17  ;;  %v816_v21 = vpop.permute.xlu0 %815 }
 0xa51   :  { %v818_v22 = vmul.f32 %v816_v21, %v812_v18 }
 0xa52   :  { %743 = vrot.lane.b32.xlu1 %v741_v20, %s2216_s3 }
 0xa53   :  { %820 = vrot.lane.b32.xlu0 %v818_v22, %s2216_s3 }
 0xac4   :  { %v744_v24 = vpop.permute.xlu1 %743 }
 0xac5   :  { %v2536_v26 = vadd.f32 %v744_v24, %v736_v23  ;;  %v821_v27 = vpop.permute.xlu0 %820 }
 0xac6   :  { %v2538_v29 = vadd.f32 %v821_v27, %v813_v25 }
 0xac7   :  { %2021 = vtanh.f32 %v2536_v26 }
 0xac8   :  { %2023 = vtanh.f32 %v2538_v29 }
 0xad1   :  { %v2022_v30 = vpop.eup %2021 }
 0xad2   :  { %v2024_v31 = vpop.eup %2023  ;;  %749 = vrot.lane.b32.xlu1 %v2022_v30, %s2208_s17 }
 0xad3   :  { %826 = vrot.lane.b32.xlu0 %v2024_v31, %s2208_s17 }
 0xb44   :  { %v750_v32 = vpop.permute.xlu1 %749 }
 0xb45   :  { %v752_v33 = vmul.f32 %v750_v32, %v735_v17  ;;  %v827_v34 = vpop.permute.xlu0 %826 }
 0xb46   :  { %v829_v36 = vmul.f32 %v827_v34, %v812_v18 }
 0xb47   :  { %835 = vrot.lane.b32.xlu0 %v752_v33, %s2208_s17 }
 0xb48   :  { %831 = vrot.lane.b32.xlu1 %v829_v36, %s2216_s3  ;;  %v912_v37 = vpack.c.bf16 %v829_v36, %v829_v36 }
 0xb4c   :  { %914 = vrot.lane.b32.xlu1 %v912_v37, %s2216_s3  ;;  %v1067_v37 = vunpack.c.h.bf16 %v2566_v41 }
 0xbb9   :  { %v836_v38 = vpop.permute.xlu0 %835 }
 0xbba   :  { %v832_v39 = vpop.permute.xlu1 %831 }
 0xbbb   :  { %v838_v40 = vsel %vm137_vm1, %v832_v39, %v836_v38 }
 0xbbc   :  { %v839_v44 = vpack.c.bf16 %v838_v40, %v838_v40 }
 0xbbe   :  { %v915_v45 = vpop.permute.xlu1 %914  ;;  %1866 = vmatmul.mubr.msk.bf16.vlgmr.msra.gmra.mrb[16].mxu1 %vm371_vm5, %v839_v44 }
 0xbbf   :  { %1874 = vmatmul.mubr.msk.bf16.vlgmr.msra.gmra.mrb[20].mxu0 %vm137_vm1, %v915_v45  ;;  %1890 = vmatpush3.bf16.msra.mxu1 %v2341_v5 }
 0xbc0   :  { %1878 = vmatpush3.bf16.msra.mxu0 %v2382_v43  ;;  %1891 = vmatprep.subr.bf16.mxu1 %v2212_v0 }
 0xbc1   :  { %1879 = vmatprep.subr.bf16.mxu0 %v2212_v0  ;;  %1885 = vmatprep.mubr.msk.bf16.mxu0 %vm2213_vm0, %v2212_v0 }
 0xbc2   :  { %1893 = vmatprep.mubr.msk.bf16.mxu1 %vm2213_vm0, %v2212_v0 }
 0xbc3   :  { %1892 = vmatpush3.bf16.msra.mxu1 %v2343_v6 }
 0xbc4   :  { %1880 = vmatpush3.bf16.msra.mxu0 %v2385_v46  ;;  %1897 = vmatprep.subr.bf16.mxu1 %v2212_v0 }
 0xbc5   :  { %1881 = vmatprep.subr.bf16.mxu0 %v2212_v0 }
 0xbc8   :  { %1882 = vmatpush3.bf16.msra.mxu0 %v2393_v47 }
 0xbc9   :  { %1883 = vmatprep.subr.bf16.mxu0 %v2212_v0 }
 0xbcc   :  { %1884 = vmatpush3.bf16.msra.mxu0 %v2399_v49 }
 0xbcd   :  { %1909 = vmatprep.subr.bf16.mxu0 %v2212_v0 }
 0xc91   :  { %v877_v48 = vpop.f32.mrb[16].mxu1 }
 0xc92   :  { %v878_v51 = vadd.f32 %v2432_v7, %v877_v48  ;;  %v1867_v52 = vpop.f32.mrb[17].mxu1  ;;  %v953_v42 = vpop.f32.mrb[20].mxu0 }
 0xc93   :  { %v959_v53 = vadd.f32 %v953_v42, %v911_v50  ;;  %v880_v54 = vpop.f32.mrb[18].mxu1  ;;  %v1875_v55 = vpop.f32.mrb[21].mxu0 }
 0xc94   :  { %v883_v56 = vmul.f32 %v878_v51, %v2369_v28  ;;  %v1868_v57 = vpop.f32.mrb[19].mxu1  ;;  %v956_v58 = vpop.f32.mrb[22].mxu0 }
 0xc95   :  { %v960_v59 = vmul.f32 %v959_v53, %v2369_v28  ;;  %v1876_v61 = vpop.f32.mrb[23].mxu0 }
 0xc96   :  { %v1659_v62 = vmul.f32 -1.442695, %v883_v56 }
 0xc97   :  { %v1661_v63 = vmul.f32 -1.442695, %v960_v59 }
 0xc98   :  { %2025 = vpow2.f32 %v1659_v62 }
 0xc99   :  { %2027 = vpow2.f32 %v1661_v63 }
 0xca2   :  { %v2026_v1 = vpop.eup %2025 }
 0xca3   :  { %v2028_v2 = vpop.eup %2027  ;;  %v887_v3 = vadd.f32 1.0, %v2026_v1 }
 0xca4   :  { %v964_v4 = vadd.f32 1.0, %v2028_v2 }
 0xca5   :  { %2029 = vrcp.f32 %v887_v3 }
 0xca6   :  { %2031 = vrcp.f32 %v964_v4 }
 0xcaf   :  { %v2030_v8 = vpop.eup %2029 }
 0xcb0   :  { %v2032_v9 = vpop.eup %2031  ;;  %v890_v10 = vmul.f32 %v2030_v8, %v2369_v28 }
 0xcb1   :  { %v967_v60 = vmul.f32 %v2032_v9, %v2369_v28 }
 0xcb2   :  { %v891_v11 = vadd.f32 %v890_v10, %v2373_v35 }
 0xcb3   :  { %v968_v12 = vadd.f32 %v967_v60, %v2373_v35 }
 0xcb4   :  { %894 = vrot.lane.b32.xlu0 %v891_v11, %s2208_s17  ;;  %v892_v17 = vmul.f32 %v891_v11, %v2536_v26 }
 0xcb5   :  { %971 = vrot.lane.b32.xlu1 %v968_v12, %s2208_s17  ;;  %v969_v19 = vmul.f32 %v968_v12, %v2538_v29 }
 0xd26   :  { %v895_v13 = vpop.permute.xlu0 %894 }
 0xd27   :  { %v897_v14 = vmul.f32 %v895_v13, %v891_v11  ;;  %v972_v15 = vpop.permute.xlu1 %971 }
 0xd28   :  { %v974_v16 = vmul.f32 %v972_v15, %v968_v12 }
 0xd29   :  { %899 = vrot.lane.b32.xlu0 %v897_v14, %s2216_s3 }
 0xd2a   :  { %976 = vrot.lane.b32.xlu1 %v974_v16, %s2216_s3 }
 0xd9b   :  { %v900_v18 = vpop.permute.xlu0 %899 }
 0xd9c   :  { %v2582_v20 = vadd.f32 %v900_v18, %v892_v17  ;;  %v977_v21 = vpop.permute.xlu1 %976 }
 0xd9d   :  { %v2584_v22 = vadd.f32 %v977_v21, %v969_v19 }
 0xd9e   :  { %2033 = vtanh.f32 %v2582_v20 }
 0xd9f   :  { %2035 = vtanh.f32 %v2584_v22 }
 0xda8   :  { %v2034_v23 = vpop.eup %2033 }
 0xda9   :  { %v2036_v24 = vpop.eup %2035  ;;  %905 = vrot.lane.b32.xlu0 %v2034_v23, %s2208_s17 }
 0xdaa   :  { %982 = vrot.lane.b32.xlu1 %v2036_v24, %s2208_s17 }
 0xe1b   :  { %v906_v25 = vpop.permute.xlu0 %905 }
 0xe1c   :  { %v908_v26 = vmul.f32 %v906_v25, %v891_v11  ;;  %v983_v27 = vpop.permute.xlu1 %982 }
 0xe1d   :  { %v985_v30 = vmul.f32 %v983_v27, %v968_v12  ;;  %v2084_v27 = vld [vmem:[#allocation8 + $0x8] sm:$0xff]  }
 0xe1e   :  { %991 = vrot.lane.b32.xlu1 %v908_v26, %s2208_s17  ;;  %v2083_v26 = vld [vmem:[#allocation8] sm:$0xff]  }
 0xe1f   :  { %987 = vrot.lane.b32.xlu0 %v985_v30, %s2216_s3  ;;  %v1068_v29 = vpack.c.bf16 %v985_v30, %v985_v30 }
 0xe23   :  { %1070 = vrot.lane.b32.xlu0 %v1068_v29, %s2216_s3 }
 0xe90   :  { %v992_v31 = vpop.permute.xlu1 %991 }
 0xe91   :  { %v988_v32 = vpop.permute.xlu0 %987 }
 0xe92   :  { %v994_v33 = vsel %vm137_vm1, %v988_v32, %v992_v31 }
 0xe93   :  { %v995_v34 = vpack.c.bf16 %v994_v33, %v994_v33 }
 0xe95   :  { %1886 = vmatmul.mubr.msk.bf16.vlgmr.msra.gmra.mrb[24].mxu0 %vm371_vm5, %v995_v34  ;;  %v1071_v36 = vpop.permute.xlu0 %1070 }
 0xe96   :  { %1894 = vmatmul.mubr.msk.bf16.vlgmr.msra.gmra.mrb[20].mxu1 %vm137_vm1, %v1071_v36  ;;  %1910 = vmatpush3.bf16.msra.mxu0 %v2341_v5 }
 0xe97   :  { %1898 = vmatpush3.bf16.msra.mxu1 %v2382_v43  ;;  %1911 = vmatprep.subr.bf16.mxu0 %v2212_v0 }
 0xe98   :  { %1899 = vmatprep.subr.bf16.mxu1 %v2212_v0  ;;  %1905 = vmatprep.mubr.msk.bf16.mxu1 %vm2213_vm0, %v2212_v0 }
 0xe99   :  { %1913 = vmatprep.mubr.msk.bf16.mxu0 %vm2213_vm0, %v2212_v0 }
 0xe9a   :  { %1912 = vmatpush3.bf16.msra.mxu0 %v2343_v6 }
 0xe9b   :  { %1900 = vmatpush3.bf16.msra.mxu1 %v2385_v46  ;;  %1917 = vmatprep.subr.bf16.mxu0 %v2212_v0 }
 0xe9c   :  { %1901 = vmatprep.subr.bf16.mxu1 %v2212_v0 }
 0xe9f   :  { %1902 = vmatpush3.bf16.msra.mxu1 %v2393_v47 }
 0xea0   :  { %1903 = vmatprep.subr.bf16.mxu1 %v2212_v0 }
 0xea3   :  { %1904 = vmatpush3.bf16.msra.mxu1 %v2399_v49 }
 0xea4   :  { %1929 = vmatprep.subr.bf16.mxu1 %v2212_v0 }
 0xf68   :  { %v1033_v5 = vpop.f32.mrb[24].mxu0 }
 0xf69   :  { %v1034_v38 = vadd.f32 %v2432_v7, %v1033_v5  ;;  %v1887_v6 = vpop.f32.mrb[25].mxu0  ;;  %v1109_v39 = vpop.f32.mrb[20].mxu1 }
 0xf6a   :  { %v1115_v40 = vadd.f32 %v1109_v39, %v1067_v37  ;;  %v1036_v44 = vpop.f32.mrb[26].mxu0  ;;  %v1895_v45 = vpop.f32.mrb[21].mxu1 }
 0xf6b   :  { %v1039_v48 = vmul.f32 %v1034_v38, %v2369_v28  ;;  %v1888_v50 = vpop.f32.mrb[27].mxu0  ;;  %v1112_v51 = vpop.f32.mrb[22].mxu1 }
 0xf6c   :  { %v1116_v52 = vmul.f32 %v1115_v40, %v2369_v28  ;;  %v1896_v42 = vpop.f32.mrb[23].mxu1 }
 0xf6d   :  { %v1663_v53 = vmul.f32 -1.442695, %v1039_v48 }
 0xf6e   :  { %v1665_v54 = vmul.f32 -1.442695, %v1116_v52 }
 0xf6f   :  { %2037 = vpow2.f32 %v1663_v53 }
 0xf70   :  { %2039 = vpow2.f32 %v1665_v54 }
 0xf79   :  { %v2038_v55 = vpop.eup %2037 }
 0xf7a   :  { %v2040_v41 = vpop.eup %2039  ;;  %v1043_v56 = vadd.f32 1.0, %v2038_v55 }
 0xf7b   :  { %v1120_v57 = vadd.f32 1.0, %v2040_v41 }
 0xf7c   :  { %2041 = vrcp.f32 %v1043_v56 }
 0xf7d   :  { %2043 = vrcp.f32 %v1120_v57 }
 0xf86   :  { %v2042_v58 = vpop.eup %2041 }
 0xf87   :  { %v2044_v59 = vpop.eup %2043  ;;  %v1046_v61 = vmul.f32 %v2042_v58, %v2369_v28 }
 0xf88   :  { %v1123_v62 = vmul.f32 %v2044_v59, %v2369_v28 }
 0xf89   :  { %v1047_v63 = vadd.f32 %v1046_v61, %v2373_v35 }
 0xf8a   :  { %v1124_v1 = vadd.f32 %v1123_v62, %v2373_v35 }
 0xf8b   :  { %1050 = vrot.lane.b32.xlu1 %v1047_v63, %s2208_s17  ;;  %v1048_v9 = vmul.f32 %v1047_v63, %v2582_v20 }
 0xf8c   :  { %1127 = vrot.lane.b32.xlu0 %v1124_v1, %s2208_s17  ;;  %v1125_v60 = vmul.f32 %v1124_v1, %v2584_v22 }
 0xffd   :  { %v1051_v2 = vpop.permute.xlu1 %1050 }
 0xffe   :  { %v1053_v3 = vmul.f32 %v1051_v2, %v1047_v63  ;;  %v1128_v4 = vpop.permute.xlu0 %1127 }
 0xfff   :  { %v1130_v8 = vmul.f32 %v1128_v4, %v1124_v1 }
0x1000   :  { %1055 = vrot.lane.b32.xlu1 %v1053_v3, %s2216_s3 }
0x1001   :  { %1132 = vrot.lane.b32.xlu0 %v1130_v8, %s2216_s3 }
0x1072   :  { %v1056_v10 = vpop.permute.xlu1 %1055 }
0x1073   :  { %v2626_v11 = vadd.f32 %v1056_v10, %v1048_v9  ;;  %v1133_v12 = vpop.permute.xlu0 %1132 }
0x1074   :  { %v2628_v13 = vadd.f32 %v1133_v12, %v1125_v60 }
0x1075   :  { %2045 = vtanh.f32 %v2626_v11 }
0x1076   :  { %2047 = vtanh.f32 %v2628_v13 }
0x107f   :  { %v2046_v14 = vpop.eup %2045 }
0x1080   :  { %v2048_v15 = vpop.eup %2047  ;;  %1061 = vrot.lane.b32.xlu1 %v2046_v14, %s2208_s17 }
0x1081   :  { %1138 = vrot.lane.b32.xlu0 %v2048_v15, %s2208_s17 }
0x10f2   :  { %v1062_v16 = vpop.permute.xlu1 %1061 }
0x10f3   :  { %v1064_v17 = vmul.f32 %v1062_v16, %v1047_v63  ;;  %v1139_v18 = vpop.permute.xlu0 %1138 }
0x10f4   :  { %v1141_v19 = vmul.f32 %v1139_v18, %v1124_v1  ;;  %v2085_v18 = vld [vmem:[#allocation9] sm:$0xff]  }
0x10f5   :  { %1147 = vrot.lane.b32.xlu0 %v1064_v17, %s2208_s17 }
0x10f6   :  { %1143 = vrot.lane.b32.xlu1 %v1141_v19, %s2216_s3  ;;  %v1224_v20 = vpack.c.bf16 %v1141_v19, %v1141_v19  ;;  %v2086_v19 = vld [vmem:[#allocation9 + $0x8] sm:$0xff]  }
0x10fa   :  { %1226 = vrot.lane.b32.xlu1 %v1224_v20, %s2216_s3 }
0x1167   :  { %v1148_v21 = vpop.permute.xlu0 %1147 }
0x1168   :  { %v1144_v22 = vpop.permute.xlu1 %1143 }
0x1169   :  { %v1150_v23 = vsel %vm137_vm1, %v1144_v22, %v1148_v21 }
0x116a   :  { %v1151_v24 = vpack.c.bf16 %v1150_v23, %v1150_v23 }
0x116c   :  { %v1227_v25 = vpop.permute.xlu1 %1226  ;;  %1906 = vmatmul.mubr.msk.bf16.vlgmr.msra.gmra.mrb[24].mxu1 %vm371_vm5, %v1151_v24 }
0x116d   :  { %1914 = vmatmul.mubr.msk.bf16.vlgmr.msra.gmra.mrb[28].mxu0 %vm137_vm1, %v1227_v25  ;;  %1930 = vmatpush3.bf16.msra.mxu1 %v2083_v26 }
0x116e   :  { %1918 = vmatpush3.bf16.msra.mxu0 %v2382_v43  ;;  %1931 = vmatprep.subr.bf16.mxu1 %v2212_v0  ;;  %v2654_v43 = vld [vmem:[#allocation2 + $0x18] sm:$0xff]  }
0x116f   :  { %1919 = vmatprep.subr.bf16.mxu0 %v2212_v0  ;;  %1925 = vmatprep.mubr.msk.bf16.mxu0 %vm2213_vm0, %v2212_v0  ;;  %v1223_v29 = vunpack.c.l.bf16 %v2654_v43  ;;  %v1379_v21 = vunpack.c.h.bf16 %v2654_v43 }
0x1170   :  { %1933 = vmatprep.mubr.msk.bf16.mxu1 %vm2213_vm0, %v2212_v0 }
0x1171   :  { %1932 = vmatpush3.bf16.msra.mxu1 %v2084_v27 }
0x1172   :  { %1920 = vmatpush3.bf16.msra.mxu0 %v2385_v46  ;;  %1937 = vmatprep.subr.bf16.mxu1 %v2212_v0 }
0x1173   :  { %1921 = vmatprep.subr.bf16.mxu0 %v2212_v0 }
0x1176   :  { %1922 = vmatpush3.bf16.msra.mxu0 %v2393_v47 }
0x1177   :  { %1923 = vmatprep.subr.bf16.mxu0 %v2212_v0 }
0x117a   :  { %1924 = vmatpush3.bf16.msra.mxu0 %v2399_v49 }
0x117b   :  { %1949 = vmatprep.subr.bf16.mxu0 %v2212_v0 }
0x123f   :  { %v1189_v30 = vpop.f32.mrb[24].mxu1 }
0x1240   :  { %v1190_v31 = vadd.f32 %v2432_v7, %v1189_v30  ;;  %v1907_v46 = vpop.f32.mrb[25].mxu1  ;;  %v1265_v32 = vpop.f32.mrb[28].mxu0 }
0x1241   :  { %v1271_v33 = vadd.f32 %v1265_v32, %v1223_v29  ;;  %v1192_v34 = vpop.f32.mrb[26].mxu1  ;;  %v1915_v36 = vpop.f32.mrb[29].mxu0 }
0x1242   :  { %v1195_v5 = vmul.f32 %v1190_v31, %v2369_v28  ;;  %v1908_v37 = vpop.f32.mrb[27].mxu1  ;;  %v1268_v38 = vpop.f32.mrb[30].mxu0 }
0x1243   :  { %v1272_v6 = vmul.f32 %v1271_v33, %v2369_v28  ;;  %v1916_v39 = vpop.f32.mrb[31].mxu0 }
0x1244   :  { %v1667_v40 = vmul.f32 -1.442695, %v1195_v5 }
0x1245   :  { %v1669_v44 = vmul.f32 -1.442695, %v1272_v6 }
0x1246   :  { %2049 = vpow2.f32 %v1667_v40 }
0x1247   :  { %2051 = vpow2.f32 %v1669_v44 }
0x1250   :  { %v2050_v45 = vpop.eup %2049 }
0x1251   :  { %v2052_v48 = vpop.eup %2051  ;;  %v1199_v50 = vadd.f32 1.0, %v2050_v45 }
0x1252   :  { %v1276_v51 = vadd.f32 1.0, %v2052_v48 }
0x1253   :  { %2053 = vrcp.f32 %v1199_v50 }
0x1254   :  { %2055 = vrcp.f32 %v1276_v51 }
0x125d   :  { %v2054_v52 = vpop.eup %2053 }
0x125e   :  { %v2056_v42 = vpop.eup %2055  ;;  %v1202_v53 = vmul.f32 %v2054_v52, %v2369_v28 }
0x125f   :  { %v1279_v54 = vmul.f32 %v2056_v42, %v2369_v28 }
0x1260   :  { %v1203_v55 = vadd.f32 %v1202_v53, %v2373_v35 }
0x1261   :  { %v1280_v41 = vadd.f32 %v1279_v54, %v2373_v35 }
0x1262   :  { %1206 = vrot.lane.b32.xlu0 %v1203_v55, %s2208_s17  ;;  %v1204_v61 = vmul.f32 %v1203_v55, %v2626_v11 }
0x1263   :  { %1283 = vrot.lane.b32.xlu1 %v1280_v41, %s2208_s17  ;;  %v1281_v63 = vmul.f32 %v1280_v41, %v2628_v13 }
0x12d4   :  { %v1207_v56 = vpop.permute.xlu0 %1206 }
0x12d5   :  { %v1209_v57 = vmul.f32 %v1207_v56, %v1203_v55  ;;  %v1284_v58 = vpop.permute.xlu1 %1283 }
0x12d6   :  { %v1286_v59 = vmul.f32 %v1284_v58, %v1280_v41 }
0x12d7   :  { %1211 = vrot.lane.b32.xlu0 %v1209_v57, %s2216_s3 }
0x12d8   :  { %1288 = vrot.lane.b32.xlu1 %v1286_v59, %s2216_s3 }
0x1349   :  { %v1212_v62 = vpop.permute.xlu0 %1211 }
0x134a   :  { %v2670_v1 = vadd.f32 %v1212_v62, %v1204_v61  ;;  %v1289_v2 = vpop.permute.xlu1 %1288 }
0x134b   :  { %v2672_v3 = vadd.f32 %v1289_v2, %v1281_v63 }
0x134c   :  { %2057 = vtanh.f32 %v2670_v1 }
0x134d   :  { %2059 = vtanh.f32 %v2672_v3 }
0x1356   :  { %v2058_v4 = vpop.eup %2057 }
0x1357   :  { %v2060_v8 = vpop.eup %2059  ;;  %1217 = vrot.lane.b32.xlu0 %v2058_v4, %s2208_s17 }
0x1358   :  { %1294 = vrot.lane.b32.xlu1 %v2060_v8, %s2208_s17 }
0x13c9   :  { %v1218_v9 = vpop.permute.xlu0 %1217 }
0x13ca   :  { %v1220_v10 = vmul.f32 %v1218_v9, %v1203_v55  ;;  %v1295_v60 = vpop.permute.xlu1 %1294 }
0x13cb   :  { %v1297_v11 = vmul.f32 %v1295_v60, %v1280_v41 }
0x13cc   :  { %1303 = vrot.lane.b32.xlu1 %v1220_v10, %s2208_s17 }
0x13cd   :  { %1299 = vrot.lane.b32.xlu0 %v1297_v11, %s2216_s3  ;;  %v1380_v12 = vpack.c.bf16 %v1297_v11, %v1297_v11 }
0x13d1   :  { %1382 = vrot.lane.b32.xlu0 %v1380_v12, %s2216_s3 }
0x143e   :  { %v1304_v13 = vpop.permute.xlu1 %1303 }
0x143f   :  { %v1300_v14 = vpop.permute.xlu0 %1299 }
0x1440   :  { %v1306_v15 = vsel %vm137_vm1, %v1300_v14, %v1304_v13 }
0x1441   :  { %v1307_v16 = vpack.c.bf16 %v1306_v15, %v1306_v15 }
0x1443   :  { %1926 = vmatmul.mubr.msk.bf16.vlgmr.msra.gmra.mrb[32].mxu0 %vm371_vm5, %v1307_v16  ;;  %v1383_v17 = vpop.permute.xlu0 %1382 }
0x1444   :  { %1934 = vmatmul.mubr.msk.bf16.vlgmr.msra.gmra.mrb[28].mxu1 %vm137_vm1, %v1383_v17  ;;  %1953 = vmatprep.mubr.msk.bf16.mxu0 %vm2213_vm0, %v2212_v0 }
0x1445   :  { %1938 = vmatpush3.bf16.msra.mxu1 %v2085_v18  ;;  %1945 = vmatprep.mubr.msk.bf16.mxu1 %vm2213_vm0, %v2212_v0 }
0x1446   :  { %1939 = vmatprep.subr.bf16.mxu1 %v2212_v0 }
0x1449   :  { %1940 = vmatpush3.bf16.msra.mxu1 %v2086_v19 }
0x144a   :  { %1941 = vmatprep.subr.bf16.mxu1 %v2212_v0 }
0x144d   :  { %1942 = vmatpush3.bf16.msra.mxu1 %v2393_v47 }
0x144e   :  { %1943 = vmatprep.subr.bf16.mxu1 %v2212_v0 }
0x1451   :  { %1944 = vmatpush3.bf16.msra.mxu1 %v2399_v49 }
0x1516   :  { %v1345_v20 = vpop.f32.mrb[32].mxu0 }
0x1517   :  { %v1346_v22 = vadd.f32 %v2432_v7, %v1345_v20  ;;  %v1927_v23 = vpop.f32.mrb[33].mxu0  ;;  %v1421_v24 = vpop.f32.mrb[28].mxu1 }
0x1518   :  { %v1427_v25 = vadd.f32 %v1421_v24, %v1379_v21  ;;  %v1348_v26 = vpop.f32.mrb[34].mxu0  ;;  %v1935_v27 = vpop.f32.mrb[29].mxu1 }
0x1519   :  { %v1351_v30 = vmul.f32 %v1346_v22, %v2369_v28  ;;  %v1928_v29 = vpop.f32.mrb[35].mxu0  ;;  %v1424_v31 = vpop.f32.mrb[30].mxu1  ;;  %v1981_v22 = vld [vmem:[%s2752_s6] sm:$0xff]  }
0x151a   :  { %v1428_v47 = vmul.f32 %v1427_v25, %v2369_v28  ;;  %v1936_v46 = vpop.f32.mrb[31].mxu1  ;;  %1950 = vmatpush3.bf16.msra.mxu0 %v1981_v22  ;;  %v1676_v27 = vld [vmem:[%s2753_s7] ss:$0 sm:$0xff] }
0x151b   :  { %v1671_v32 = vmul.f32 -1.442695, %v1351_v30  ;;  %1951 = vmatprep.subr.bf16.mxu0 %v2212_v0 }
0x151c   :  { %v1673_v33 = vmul.f32 -1.442695, %v1428_v47 }
0x151d   :  { %2061 = vpow2.f32 %v1671_v32 }
0x151e   :  { %2063 = vpow2.f32 %v1673_v33 }
0x1527   :  { %v2062_v49 = vpop.eup %2061 }
0x1528   :  { %v2064_v43 = vpop.eup %2063  ;;  %v1355_v34 = vadd.f32 1.0, %v2062_v49 }
0x1529   :  { %v1432_v7 = vadd.f32 1.0, %v2064_v43 }
0x152a   :  { %2065 = vrcp.f32 %v1355_v34 }
0x152b   :  { %2067 = vrcp.f32 %v1432_v7 }
0x1534   :  { %v2066_v36 = vpop.eup %2065 }
0x1535   :  { %v2068_v5 = vpop.eup %2067  ;;  %v1358_v37 = vmul.f32 %v2066_v36, %v2369_v28 }
0x1536   :  { %v1435_v38 = vmul.f32 %v2068_v5, %v2369_v28 }
0x1537   :  { %v1359_v6 = vadd.f32 %v1358_v37, %v2373_v35 }
0x1538   :  { %v1436_v39 = vadd.f32 %v1435_v38, %v2373_v35 }
0x1539   :  { %1362 = vrot.lane.b32.xlu1 %v1359_v6, %s2208_s17  ;;  %v1360_v50 = vmul.f32 %v1359_v6, %v2670_v1 }
0x153a   :  { %1439 = vrot.lane.b32.xlu0 %v1436_v39, %s2208_s17  ;;  %v1437_v52 = vmul.f32 %v1436_v39, %v2672_v3  ;;  %v2087_v3 = vld [vmem:[%s2751_s5] ss:$0 sm:$0xff] }
0x15ab   :  { %v1363_v40 = vpop.permute.xlu1 %1362 }
0x15ac   :  { %v1365_v44 = vmul.f32 %v1363_v40, %v1359_v6  ;;  %v1440_v45 = vpop.permute.xlu0 %1439 }
0x15ad   :  { %v1442_v48 = vmul.f32 %v1440_v45, %v1436_v39 }
0x15ae   :  { %1367 = vrot.lane.b32.xlu1 %v1365_v44, %s2216_s3 }
0x15af   :  { %1444 = vrot.lane.b32.xlu0 %v1442_v48, %s2216_s3 }
0x1620   :  { %v1368_v51 = vpop.permute.xlu1 %1367 }
0x1621   :  { %v1370_v42 = vadd.f32 %v1368_v51, %v1360_v50  ;;  %v1445_v53 = vpop.permute.xlu0 %1444 }
0x1622   :  { %v1447_v54 = vadd.f32 %v1445_v53, %v1437_v52 }
0x1623   :  { %2069 = vtanh.f32 %v1370_v42 }
0x1624   :  { %2071 = vtanh.f32 %v1447_v54 }
0x162d   :  { %v2070_v55 = vpop.eup %2069 }
0x162e   :  { %v2072_v41 = vpop.eup %2071  ;;  %1373 = vrot.lane.b32.xlu1 %v2070_v55, %s2208_s17 }
0x162f   :  { %1450 = vrot.lane.b32.xlu0 %v2072_v41, %s2208_s17 }
0x16a0   :  { %v1374_v56 = vpop.permute.xlu1 %1373 }
0x16a1   :  { %v1376_v57 = vmul.f32 %v1374_v56, %v1359_v6  ;;  %v1451_v58 = vpop.permute.xlu0 %1450 }
0x16a2   :  { %v1453_v59 = vmul.f32 %v1451_v58, %v1436_v39 }
0x16a3   :  { %1459 = vrot.lane.b32.xlu0 %v1376_v57, %s2208_s17 }
0x16a4   :  { %1455 = vrot.lane.b32.xlu1 %v1453_v59, %s2216_s3 }
0x1715   :  { %v1460_v61 = vpop.permute.xlu0 %1459 }
0x1716   :  { %v1456_v62 = vpop.permute.xlu1 %1455 }
0x1717   :  { %v1462_v63 = vsel %vm137_vm1, %v1456_v62, %v1460_v61 }
0x1718   :  { %v1463_v1 = vpack.c.bf16 %v1462_v63, %v1462_v63 }
0x171a   :  { %1946 = vmatmul.mubr.msk.bf16.vlgmr.msra.gmra.mrb[32].mxu1 %vm371_vm5, %v1463_v1 }
0x17ed   :  { %v1501_v2 = vpop.f32.mrb[32].mxu1 }
0x17ee   :  { %v1502_v4 = vadd.f32 %v2087_v3, %v1501_v2  ;;  %v1947_v8 = vpop.f32.mrb[33].mxu1 }
0x17ef   :  { %v1504_v9 = vpop.f32.mrb[34].mxu1 }
0x17f0   :  { %v1507_v10 = vmul.f32 %v1502_v4, %v2369_v28  ;;  %v1948_v60 = vpop.f32.mrb[35].mxu1 }
0x17f2   :  { %v1675_v11 = vmul.f32 -1.442695, %v1507_v10 }
0x17f4   :  { %2073 = vpow2.f32 %v1675_v11 }
0x17fe   :  { %v2074_v12 = vpop.eup %2073 }
0x17ff   :  { %v1511_v13 = vadd.f32 1.0, %v2074_v12 }
0x1801   :  { %2075 = vrcp.f32 %v1511_v13 }
0x180b   :  { %v2076_v14 = vpop.eup %2075 }
0x180c   :  { %v1514_v15 = vmul.f32 %v2076_v14, %v2369_v28  ;;  %v1982_v28 = vld [vmem:[%s2752_s6 + $0x8] sm:$0xff]   ;;  %s2217_s6 = smov [#allocation11]  }
0x180d   :  { %1952 = vmatpush3.bf16.msra.mxu0 %v1982_v28 }
0x180e   :  { %v1515_v16 = vadd.f32 %v1514_v15, %v2373_v35 }
0x1810   :  { %1518 = vrot.lane.b32.xlu1 %v1515_v16, %s2208_s17  ;;  %v1516_v19 = vmul.f32 %v1515_v16, %v1370_v42 }
0x1882   :  { %v1519_v17 = vpop.permute.xlu1 %1518 }
0x1883   :  { %v1521_v18 = vmul.f32 %v1519_v17, %v1515_v16 }
0x1885   :  { %1523 = vrot.lane.b32.xlu0 %v1521_v18, %s2216_s3 }
0x18f7   :  { %v1524_v20 = vpop.permute.xlu0 %1523 }
0x18f8   :  { %v1526_v21 = vadd.f32 %v1524_v20, %v1516_v19 }
0x18fa   :  { %2077 = vtanh.f32 %v1526_v21 }
0x1904   :  { %v2078_v35 = vpop.eup %2077 }
0x1905   :  { %1529 = vrot.lane.b32.xlu1 %v2078_v35, %s2208_s17  ;;  %s1616_s17 = sshll.u32 %s2217_s6, 4  ;;  %s1617_s17 = int_to_ptr.vmem [resolvable:$true] %s1616_s17 }
0x1906   :  { %s2176_s21 = scalar_lea.vmem %s1617_s17, 128  ;;  %p2181_p5 = scmp.lt.s32.totalorder %s1617_s17, %s1617_s17 }
0x1907   :  { %p2177_p4 = scmp.ne.s32.totalorder %s1617_s17, %s2176_s21  ;;  %p2182_p6 = scmp.lt.s32.totalorder %s2176_s21, %s2176_s21 }
0x1909   :  { %p2183_p7 = por %p2182_p6, %p2181_p5 }
0x190b   :  { %p2184_p8 = pnand %p2183_p7, %p2177_p4 }
0x1977   :  { %v1530_v23 = vpop.permute.xlu1 %1529 }
0x1978   :  { %v1532_v24 = vmul.f32 %v1530_v23, %v1515_v16 }
0x197a   :  { %v1533_v25 = vpack.c.bf16 %v1532_v24, %v1532_v24 }
0x197c   :  { %1546 = vrot.lane.b32.xlu0 %v1533_v25, %s2216_s3 }
0x19ee   :  { %v1547_v26 = vpop.permute.xlu0 %1546 }
0x19ef   :  { %1954 = vmatmul.mubr.msk.bf16.vlgmr.msra.gmra.mrb[36].mxu0 %vm137_vm1, %v1547_v26 }
0x1ac2   :  { %v1597_v30 = vpop.f32.mrb[36].mxu0 }
0x1ac3   :  { %v1598_v29 = vadd.f32 %v1676_v27, %v1597_v30  ;;  %v1955_v31 = vpop.f32.mrb[37].mxu0 }
0x1ac4   :  { %v1600_v0 = vpop.f32.mrb[38].mxu0 }
0x1ac5   :  { %v1680_v47 = vmul.f32 -1.442695, %v1598_v29  ;;  %v1956_v46 = vpop.f32.mrb[39].mxu0 }
0x1ac7   :  { %2079 = vpow2.f32 %v1680_v47 }
0x1ad1   :  { %v2080_v32 = vpop.eup %2079 }
0x1ad2   :  { %v1606_v33 = vadd.f32 1.0, %v2080_v32 }
0x1ad4   :  { %2081 = vrcp.f32 %v1606_v33 }
0x1ade   :  { %v2082_v49 = vpop.eup %2081 }
0x1adf   :  { %1609 = vst [vmem:[#allocation11] sm:$0xff] %v2082_v49 }
0x1ae0   :  { %2187 = shalt.err (!%p2184_p8)
}
0x1ae1   :  { %s2188_s30 = scalar_lea.hbm %s2754_s8, 128 }
0x1ae2   :  { %p2189_p9 = scmp.ne.s32.totalorder %s2754_s8, %s2188_s30  ;;  %p2192_p10 = scmp.lt.u32.totalorder %s2188_s30, %s2754_s8 }
0x1ae4   :  { %p2194_p11 = pnand %p2192_p10, %p2189_p9 }
0x1ae6   :  { %2197 = shalt.err (!%p2194_p11)
}
0x1ae7   :  { %1619 = dma.vmem_to_hbm [thread:$0]  %s1617_s17, 128, %s2754_s8, [#allocation5]  }
0x1ae8   :  { %2204 = dma.done.wait [#allocation5], 128  }
0x1ae9   :  { %2205 = vsyncadd [#allocation5], 4294967168 }
0x1aea   :  { %1623 = vsyncpa [#allocation4], 1 }
0x1aeb   :  { %1624 = vsyncpa [#allocation7], 1 }
0x1aec   :  { %1625 = vsyncpa [#allocation10], 1 }
0x1aed   :  { %1626 = vsyncpa [#allocation5], 1 }

</bundles_post_ra>
